<compile_context>
chip_gen: v5e
topology: v5e:2x2
jax: 0.10.0
libtpu: 0.0.40
codegen_flags: <defaults>
</compile_context>

<pallas_src>
import functools
import math
import numbers

import jax
import jax.numpy as jnp
from jax.experimental import pallas as pl
from jax.experimental.pallas import tpu as pltpu

_SQRT3 = math.sqrt(3.0)
_INV_TWO_PI = 1.0 / (2.0 * math.pi)
_HUE_SHIFT = 255.0 / 360.0
_TAN_PI_8 = math.sqrt(2.0) - 1.0   # tan(pi/8)
_PARAM_STRIDE = 8                  # scalars per sample in the SMEM table


def _recip(x):
    """Approximate 1/x on the EUP slot (free w.r.t. the binding VALU slot)."""
    return pl.reciprocal(x, approx=True)


def _frac(x):
    """Floor-mod by 1 (matches torch float `% 1`)."""
    return x - jnp.floor(x)


def _atan2(y, x):
    # VPU-friendly atan2: abs/min/max range reduction + short odd polynomial.
    ax = jnp.abs(x)
    ay = jnp.abs(y)
    mx = jnp.maximum(ax, ay)
    mn = jnp.minimum(ax, ay)
    nonzero = mx > 0.0
    z = mn * _recip(jnp.where(nonzero, mx, 1.0))
    z = jnp.where(nonzero, z, 0.0)               # atan2(0, 0) = 0
    big = z > _TAN_PI_8
    w = jnp.where(big, (z - 1.0) * _recip(z + 1.0), z)
    w2 = w * w
    # degree-7 odd poly, |w| <= tan(pi/8): |err| < 5e-5 rad (fine for aug).
    p = 0.2 + w2 * (-1.0 / 7.0)
    p = -1.0 / 3.0 + w2 * p
    p = w + w * w2 * p                            # atan(w)
    a = jnp.where(big, math.pi / 4.0 + p, p)      # atan(z), z in [0, 1]
    a = jnp.where(ay > ax, math.pi / 2.0 - a, a)  # atan(|y|/|x|)
    a = jnp.where(x < 0.0, math.pi - a, a)
    a = jnp.where(y < 0.0, -a, a)
    return a


def _rgb2hsv(r, g, b):
    cmax = jnp.maximum(jnp.maximum(r, g), b)
    cmin = jnp.minimum(jnp.minimum(r, g), b)
    delta = cmax - cmin
    hue = _atan2(_SQRT3 * (g - b), 2.0 * r - g - b)
    h = _frac(hue * _INV_TWO_PI)                  # == (hue mod 2pi) / 2pi
    # torch zeroes non-finite hsv; only s (= delta/cmax) can be non-finite and
    # only when cmax == 0, so guard on cmax > 0 instead of isfinite.
    pos = cmax > 0.0
    s = jnp.where(pos, delta * _recip(jnp.where(pos, cmax, 1.0)), 0.0)
    return h, s, cmax


def _hsv2rgb(h, s, v):
    c = v * s
    h6 = h * 6.0                                  # hoisted out of the 3 channels

    def chan(n):
        k = n + h6                                # in [n, n + 6), n in {1,3,5}
        k = jnp.where(k >= 6.0, k - 6.0, k)       # (n + h*6) mod 6
        t = jnp.clip(jnp.minimum(k, 4.0 - k), 0.0, 1.0)
        return v - c * t

    return chan(5.0), chan(3.0), chan(1.0)        # (r, g, b)


def _adjust_hsv(r, g, b, fh, fs, fv):
    h, s, v = _rgb2hsv(r, g, b)
    h = _frac(h + fh * _HUE_SHIFT)                # clamp(h, 0, 1) is redundant
    s = jnp.clip(s * fs, 0.0, 1.0)
    v = jnp.clip(v * fv, 0.0, 1.0)
    return _hsv2rgb(h, s, v)


def _adjust_contrast(r, g, b, fc, inv_hw):
    # (ch - m)*fc + m == ch*fc + m*(1-fc); fold (1-fc)/HW into one scalar so the
    # per-element work is mul+add+clip (zero padding contributes 0 to the sum).
    w_mean = (1.0 - fc) * inv_hw
    out = []
    for ch in (r, g, b):
        mw = jnp.sum(ch) * w_mean
        out.append(jnp.clip(ch * fc + mw, 0.0, 1.0))
    return tuple(out)


def _color_jitter_kernel(params_ref, x_ref, o_ref, *, bt, inv_hw, contrast_first):
    # params_ref: SMEM (B*8,) f32; per sample [mask, fc, fh, fs, fv, 0, 0, 0].
    # x_ref / o_ref: VMEM (bt, 3, S, 128) tile covering bt batch elements.
    blk = pl.program_id(0)
    for j in range(bt):                           # short unrolled per-sample loop
        base = (blk * bt + j) * _PARAM_STRIDE
        m = params_ref[base + 0]
        fc = params_ref[base + 1]
        fh = params_ref[base + 2]
        fs = params_ref[base + 3]
        fv = params_ref[base + 4]

        @pl.when(m == 0.0)
        def _passthrough(j=j):
            # bernoulli mask is exactly 0 -> output is the untouched input.
            o_ref[j] = x_ref[j]

        @pl.when(m != 0.0)
        def _transform(j=j, fc=fc, fh=fh, fs=fs, fv=fv):
            # per-channel loads: no full (3,S,128) f32 slab / jnp.stack relayout.
            r = x_ref[j, 0].astype(jnp.float32)
            g = x_ref[j, 1].astype(jnp.float32)
            b = x_ref[j, 2].astype(jnp.float32)
            if contrast_first:
                r, g, b = _adjust_contrast(r, g, b, fc, inv_hw)
                r, g, b = _adjust_hsv(r, g, b, fh, fs, fv)
            else:
                r, g, b = _adjust_hsv(r, g, b, fh, fs, fv)
                r, g, b = _adjust_contrast(r, g, b, fc, inv_hw)
            # mask is exactly 1 here, so the torch blend reduces to the transform.
            o_ref[j, 0] = r.astype(o_ref.dtype)
            o_ref[j, 1] = g.astype(o_ref.dtype)
            o_ref[j, 2] = b.astype(o_ref.dtype)


@functools.partial(
    jax.jit,
    static_argnames=("prob", "brightness", "contrast", "saturation", "hue"))
def _color_jitter_forward(x, key, *, prob, brightness, contrast, saturation, hue):
    B, C, H, W = x.shape
    assert C == 3, "ColorJitterLayer operates on RGB (3-channel) images."
    assert jnp.issubdtype(x.dtype, jnp.floating), (
        "ColorJitterLayer expects float images in [0, 1]; integer inputs would "
        "be zeroed by the clip-to-[0,1] transform path.")
    HW = H * W
    S = pl.cdiv(HW, 128)
    pad = S * 128 - HW
    f32 = jnp.float32
    itemsize = jnp.dtype(x.dtype).itemsize

    kb, kc, kh, ks, kv, ko = jax.random.split(key, 6)
    mask = jax.random.bernoulli(kb, prob, (B,)).astype(f32)
    fc = (jax.random.uniform(kc, (B,), f32, contrast[0], contrast[1])
          if contrast else jnp.ones((B,), f32))
    fh = (jax.random.uniform(kh, (B,), f32, hue[0], hue[1])
          if hue else jnp.zeros((B,), f32))
    fs = (jax.random.uniform(ks, (B,), f32, saturation[0], saturation[1])
          if saturation else jnp.ones((B,), f32))
    fv = (jax.random.uniform(kv, (B,), f32, brightness[0], brightness[1])
          if brightness else jnp.ones((B,), f32))
    # np.random.rand() > 0.5 transform-order coin flip (one per forward call),
    # kept on-device so the whole forward stays jittable (no host sync).
    contrast_first = jax.random.uniform(ko, (), f32) > 0.5

    zeros = jnp.zeros((B,), f32)
    params = jnp.stack([mask, fc, fh, fs, fv, zeros, zeros, zeros],
                       axis=1).reshape(-1)        # flat (B*8,) SMEM table

    # Lane/sublane-dense layout (B, 3, S, 128); the reshape is a bitcast when
    # HW % 128 == 0 (32^2, 64^2, 224^2, 256^2 all hit the no-pad fast path).
    x_flat = x.reshape(B, C, HW)
    if pad:
        x_flat = jnp.pad(x_flat, ((0, 0), (0, 0), (0, pad)))
    x_tiled = x_flat.reshape(B, C, S, 128)

    # Batch-block small images: one grid step / one DMA covers Bt samples,
    # amortizing the ~0.35 us per-step overhead and filling sublanes when S < 8.
    per_sample_vmem = 4 * C * S * 128 * itemsize + 12 * S * 128 * 4
    bt_cap = max(1, min(16, (12 << 20) // per_sample_vmem))
    Bt = 1
    for d in range(1, B + 1):
        if B % d == 0 and d <= bt_cap:
            Bt = d

    block_vmem = Bt * per_sample_vmem + (1 << 20)
    vmem_limit = (int(min(block_vmem + (4 << 20), 96 << 20))
                  if block_vmem > (12 << 20) else None)
    # TODO(synk): very large images need a spatial grid axis + two-pass contrast
    # mean instead of the in-block reduction (v7x has only 64 MiB VMEM).

    def _run(cfirst):
        kernel = functools.partial(
            _color_jitter_kernel, bt=Bt, inv_hw=1.0 / HW, contrast_first=cfirst)
        return pl.pallas_call(
            kernel,
            out_shape=jax.ShapeDtypeStruct((B, C, S, 128), x.dtype),
            grid=(B // Bt,),
            in_specs=[
                pl.BlockSpec(memory_space=pltpu.MemorySpace.SMEM),      # params
                pl.BlockSpec((Bt, C, S, 128), lambda i: (i, 0, 0, 0)),  # x tile
            ],
            out_specs=pl.BlockSpec((Bt, C, S, 128), lambda i: (i, 0, 0, 0)),
            compiler_params=pltpu.CompilerParams(
                dimension_semantics=("parallel",),
                vmem_limit_bytes=vmem_limit),
        )(params, x_tiled)

    # The order is baked in statically per branch, so each compiled kernel
    # carries exactly one transform order (half the instruction footprint).
    out = jax.lax.cond(contrast_first, lambda: _run(True), lambda: _run(False))

    out = out.reshape(B, C, S * 128)
    if pad:
        out = out[:, :, :HW]
    return out.reshape(B, C, H, W)


class ColorJitterLayer:
    """JAX/Pallas port of the PyTorch ColorJitterLayer forward pass."""

    def __init__(self, p, brightness, contrast, saturation, hue):
        self.prob = float(p)
        self.brightness = self._check_input(brightness, "brightness")
        self.contrast = self._check_input(contrast, "contrast")
        self.saturation = self._check_input(saturation, "saturation")
        self.hue = self._check_input(
            hue, "hue", center=0, bound=(-0.5, 0.5), clip_first_on_zero=False)

    @staticmethod
    def _check_input(value, name, center=1, bound=(0, float("inf")),
                     clip_first_on_zero=True):
        if isinstance(value, numbers.Number):
            if value < 0:
                raise ValueError(f"If {name} is a single number, it must be non negative.")
            value = [center - value, center + value]
            if clip_first_on_zero:
                value[0] = max(value[0], 0)
        elif isinstance(value, (tuple, list)) and len(value) == 2:
            if not bound[0] <= value[0] <= value[1] <= bound[1]:
                raise ValueError(f"{name} values should be between {bound}")
        else:
            raise TypeError(f"{name} should be a single number or a list/tuple of length 2.")
        if value[0] == value[1] == center:
            return None
        return (float(value[0]), float(value[1]))   # hashable -> jit static arg

    def __call__(self, x, key):
        return _color_jitter_forward(
            x, key, prob=self.prob, brightness=self.brightness,
            contrast=self.contrast, saturation=self.saturation, hue=self.hue)


if __name__ == "__main__":
    key = jax.random.PRNGKey(0)
    kx, kcall = jax.random.split(key)

    B, C, H, W = 2, 3, 16, 16
    x = jax.random.uniform(kx, (B, C, H, W), jnp.float32)

    layer = ColorJitterLayer(p=0.8, brightness=0.4, contrast=0.4,
                             saturation=0.4, hue=0.1)
    y = layer(x, kcall)
    jax.block_until_ready(y)
    assert y.shape == (B, C, H, W) and y.dtype == x.dtype
    assert bool(jnp.all(jnp.isfinite(y)))
    assert bool(jnp.all((y >= -1e-6) & (y <= 1.0 + 1e-6)))

    # p = 0 -> bernoulli mask is all zeros -> bit-exact passthrough branch.
    layer_id = ColorJitterLayer(p=0.0, brightness=0.4, contrast=0.4,
                                saturation=0.4, hue=0.1)
    y_id = layer_id(x, kcall)
    jax.block_until_ready(y_id)
    assert bool(jnp.array_equal(y_id, x))

    print("KERNEL_OK")
</pallas_src>

<mosaic_0001>
module attributes {stable_mosaic.version = 11 : i64} {
  func.func @_color_jitter_kernel(%arg0: i32, %arg1: memref<16xf32, #tpu.memory_space<smem>>, %arg2: memref<2x3x2x128xf32, #tpu.memory_space<vmem>>, %arg3: memref<2x3x2x128xf32, #tpu.memory_space<vmem>>) attributes {dimension_semantics = [#tpu.dimension_semantics<parallel>], iteration_bounds = array<i64: 1>, scalar_prefetch = 0 : i64, scratch_operands = 0 : i64, tpu.core_type = #tpu.core_type<tc>, window_params = [{transform_indices = @transform_0, window_bounds = array<i64: 16>}, {transform_indices = @transform_1, window_bounds = array<i64: 2, 3, 2, 128>}, {transform_indices = @transform_2, window_bounds = array<i64: 2, 3, 2, 128>}]} {
    %c2_i32 = arith.constant 2 : i32
    %0 = arith.muli %arg0, %c2_i32 : i32
    %c0_i32 = arith.constant 0 : i32
    %1 = arith.addi %0, %c0_i32 : i32
    %c8_i32 = arith.constant 8 : i32
    %2 = arith.muli %1, %c8_i32 : i32
    %c0_i32_0 = arith.constant 0 : i32
    %3 = arith.addi %2, %c0_i32_0 : i32
    %4 = arith.index_cast %3 : i32 to index
    %5 = memref.load %arg1[%4] : memref<16xf32, #tpu.memory_space<smem>>
    %c1_i32 = arith.constant 1 : i32
    %6 = arith.addi %2, %c1_i32 : i32
    %7 = arith.index_cast %6 : i32 to index
    %8 = memref.load %arg1[%7] : memref<16xf32, #tpu.memory_space<smem>>
    %c2_i32_1 = arith.constant 2 : i32
    %9 = arith.addi %2, %c2_i32_1 : i32
    %10 = arith.index_cast %9 : i32 to index
    %11 = memref.load %arg1[%10] : memref<16xf32, #tpu.memory_space<smem>>
    %c3_i32 = arith.constant 3 : i32
    %12 = arith.addi %2, %c3_i32 : i32
    %13 = arith.index_cast %12 : i32 to index
    %14 = memref.load %arg1[%13] : memref<16xf32, #tpu.memory_space<smem>>
    %c4_i32 = arith.constant 4 : i32
    %15 = arith.addi %2, %c4_i32 : i32
    %16 = arith.index_cast %15 : i32 to index
    %17 = memref.load %arg1[%16] : memref<16xf32, #tpu.memory_space<smem>>
    %cst = arith.constant 0.000000e+00 : f32
    %18 = arith.cmpf oeq, %5, %cst : f32
    %19 = arith.extui %18 : i1 to i32
    %c0_i32_2 = arith.constant 0 : i32
    %20 = arith.cmpi ne, %19, %c0_i32_2 : i32
    scf.if %20 {
      %c0 = arith.constant 0 : index
      %c0_17 = arith.constant 0 : index
      %c0_18 = arith.constant 0 : index
      %c0_19 = arith.constant 0 : index
      %48 = vector.load %arg2[%c0, %c0_17, %c0_18, %c0_19] : memref<2x3x2x128xf32, #tpu.memory_space<vmem>>, vector<1x3x2x128xf32>
      %49 = vector.shape_cast %48 : vector<1x3x2x128xf32> to vector<3x2x128xf32>
      %c0_20 = arith.constant 0 : index
      %c0_21 = arith.constant 0 : index
      %c0_22 = arith.constant 0 : index
      %c0_23 = arith.constant 0 : index
      %50 = vector.load %arg3[%c0_20, %c0_21, %c0_22, %c0_23] : memref<2x3x2x128xf32, #tpu.memory_space<vmem>>, vector<1x3x2x128xf32>
      %51 = vector.shape_cast %50 : vector<1x3x2x128xf32> to vector<3x2x128xf32>
      %52 = vector.shape_cast %49 : vector<3x2x128xf32> to vector<1x3x2x128xf32>
      tpu.vector_store %arg3[%c0_20, %c0_21, %c0_22, %c0_23], %52 {strides = array<i32>} : memref<2x3x2x128xf32, #tpu.memory_space<vmem>>, vector<1x3x2x128xf32>,
    } else {
    }
    %cst_3 = arith.constant 0.000000e+00 : f32
    %21 = arith.cmpf one, %5, %cst_3 : f32
    %22 = arith.extui %21 : i1 to i32
    %c0_i32_4 = arith.constant 0 : i32
    %23 = arith.cmpi ne, %22, %c0_i32_4 : i32
    scf.if %23 {
      %c0 = arith.constant 0 : index
      %c0_17 = arith.constant 0 : index
      %c0_18 = arith.constant 0 : index
      %c0_19 = arith.constant 0 : index
      %48 = vector.load %arg2[%c0, %c0_17, %c0_18, %c0_19] : memref<2x3x2x128xf32, #tpu.memory_space<vmem>>, vector<1x1x2x128xf32>
      %49 = vector.shape_cast %48 : vector<1x1x2x128xf32> to vector<2x128xf32>
      %c0_20 = arith.constant 0 : index
      %c1 = arith.constant 1 : index
      %c0_21 = arith.constant 0 : index
      %c0_22 = arith.constant 0 : index
      %50 = vector.load %arg2[%c0_20, %c1, %c0_21, %c0_22] : memref<2x3x2x128xf32, #tpu.memory_space<vmem>>, vector<1x1x2x128xf32>
      %51 = vector.shape_cast %50 : vector<1x1x2x128xf32> to vector<2x128xf32>
      %c0_23 = arith.constant 0 : index
      %c2 = arith.constant 2 : index
      %c0_24 = arith.constant 0 : index
      %c0_25 = arith.constant 0 : index
      %52 = vector.load %arg2[%c0_23, %c2, %c0_24, %c0_25] : memref<2x3x2x128xf32, #tpu.memory_space<vmem>>, vector<1x1x2x128xf32>
      %53 = vector.shape_cast %52 : vector<1x1x2x128xf32> to vector<2x128xf32>
      %54 = arith.maximumf %49, %51 : vector<2x128xf32>
      %55 = arith.maximumf %54, %53 : vector<2x128xf32>
      %56 = arith.minimumf %49, %51 : vector<2x128xf32>
      %57 = arith.minimumf %56, %53 : vector<2x128xf32>
      %58 = arith.subf %55, %57 : vector<2x128xf32>
      %59 = arith.subf %51, %53 : vector<2x128xf32>
      %cst_26 = arith.constant 1.73205078 : f32
      %60 = vector.broadcast %cst_26 : f32 to vector<2x128xf32>
      %61 = arith.mulf %60, %59 : vector<2x128xf32>
      %cst_27 = arith.constant 2.000000e+00 : f32
      %62 = vector.broadcast %cst_27 : f32 to vector<2x128xf32>
      %63 = arith.mulf %62, %49 : vector<2x128xf32>
      %64 = arith.subf %63, %51 : vector<2x128xf32>
      %65 = arith.subf %64, %53 : vector<2x128xf32>
      %66 = math.absf %65 : vector<2x128xf32>
      %67 = math.absf %61 : vector<2x128xf32>
      %68 = arith.maximumf %66, %67 : vector<2x128xf32>
      %69 = arith.minimumf %66, %67 : vector<2x128xf32>
      %cst_28 = arith.constant 0.000000e+00 : f32
      %70 = vector.broadcast %cst_28 : f32 to vector<2x128xf32>
      %71 = arith.cmpf ogt, %68, %70 : vector<2x128xf32>
      %cst_29 = arith.constant 1.000000e+00 : f32
      %72 = vector.broadcast %cst_29 : f32 to vector<2x128xf32>
      %73 = arith.select %71, %68, %72 : vector<2x128xi1>, vector<2x128xf32>
      %74 = tpu.reciprocal %73 {approx = true} : vector<2x128xf32> -> vector<2x128xf32>
      %75 = arith.mulf %69, %74 : vector<2x128xf32>
      %cst_30 = arith.constant 0.000000e+00 : f32
      %76 = vector.broadcast %cst_30 : f32 to vector<2x128xf32>
      %77 = arith.select %71, %75, %76 : vector<2x128xi1>, vector<2x128xf32>
      %cst_31 = arith.constant 0.414213568 : f32
      %78 = vector.broadcast %cst_31 : f32 to vector<2x128xf32>
      %79 = arith.cmpf ogt, %77, %78 : vector<2x128xf32>
      %cst_32 = arith.constant 1.000000e+00 : f32
      %80 = vector.broadcast %cst_32 : f32 to vector<2x128xf32>
      %81 = arith.subf %77, %80 : vector<2x128xf32>
      %cst_33 = arith.constant 1.000000e+00 : f32
      %82 = vector.broadcast %cst_33 : f32 to vector<2x128xf32>
      %83 = arith.addf %77, %82 : vector<2x128xf32>
      %84 = tpu.reciprocal %83 {approx = true} : vector<2x128xf32> -> vector<2x128xf32>
      %85 = arith.mulf %81, %84 : vector<2x128xf32>
      %86 = arith.select %79, %85, %77 : vector<2x128xi1>, vector<2x128xf32>
      %87 = arith.mulf %86, %86 : vector<2x128xf32>
      %cst_34 = arith.constant -0.142857149 : f32
      %88 = vector.broadcast %cst_34 : f32 to vector<2x128xf32>
      %89 = arith.mulf %87, %88 : vector<2x128xf32>
      %cst_35 = arith.constant 2.000000e-01 : f32
      %90 = vector.broadcast %cst_35 : f32 to vector<2x128xf32>
      %91 = arith.addf %90, %89 : vector<2x128xf32>
      %92 = arith.mulf %87, %91 : vector<2x128xf32>
      %cst_36 = arith.constant -0.333333343 : f32
      %93 = vector.broadcast %cst_36 : f32 to vector<2x128xf32>
      %94 = arith.addf %93, %92 : vector<2x128xf32>
      %95 = arith.mulf %86, %87 : vector<2x128xf32>
      %96 = arith.mulf %95, %94 : vector<2x128xf32>
      %97 = arith.addf %86, %96 : vector<2x128xf32>
      %cst_37 = arith.constant 0.785398185 : f32
      %98 = vector.broadcast %cst_37 : f32 to vector<2x128xf32>
      %99 = arith.addf %98, %97 : vector<2x128xf32>
      %100 = arith.select %79, %99, %97 : vector<2x128xi1>, vector<2x128xf32>
      %101 = arith.cmpf ogt, %67, %66 : vector<2x128xf32>
      %cst_38 = arith.constant 1.57079637 : f32
      %102 = vector.broadcast %cst_38 : f32 to vector<2x128xf32>
      %103 = arith.subf %102, %100 : vector<2x128xf32>
      %104 = arith.select %101, %103, %100 : vector<2x128xi1>, vector<2x128xf32>
      %cst_39 = arith.constant 0.000000e+00 : f32
      %105 = vector.broadcast %cst_39 : f32 to vector<2x128xf32>
      %106 = arith.cmpf olt, %65, %105 : vector<2x128xf32>
      %cst_40 = arith.constant 3.14159274 : f32
      %107 = vector.broadcast %cst_40 : f32 to vector<2x128xf32>
      %108 = arith.subf %107, %104 : vector<2x128xf32>
      %109 = arith.select %106, %108, %104 : vector<2x128xi1>, vector<2x128xf32>
      %cst_41 = arith.constant 0.000000e+00 : f32
      %110 = vector.broadcast %cst_41 : f32 to vector<2x128xf32>
      %111 = arith.cmpf olt, %61, %110 : vector<2x128xf32>
      %cst_42 = arith.constant 0.000000e+00 : f32
      %112 = vector.broadcast %cst_42 : f32 to vector<2x128xf32>
      %113 = arith.subf %112, %109 : vector<2x128xf32>
      %114 = arith.select %111, %113, %109 : vector<2x128xi1>, vector<2x128xf32>
      %cst_43 = arith.constant 0.159154937 : f32
      %115 = vector.broadcast %cst_43 : f32 to vector<2x128xf32>
      %116 = arith.mulf %114, %115 : vector<2x128xf32>
      %117 = math.floor %116 : vector<2x128xf32>
      %118 = arith.subf %116, %117 : vector<2x128xf32>
      %cst_44 = arith.constant 0.000000e+00 : f32
      %119 = vector.broadcast %cst_44 : f32 to vector<2x128xf32>
      %120 = arith.cmpf ogt, %55, %119 : vector<2x128xf32>
      %cst_45 = arith.constant 1.000000e+00 : f32
      %121 = vector.broadcast %cst_45 : f32 to vector<2x128xf32>
      %122 = arith.select %120, %55, %121 : vector<2x128xi1>, vector<2x128xf32>
      %123 = tpu.reciprocal %122 {approx = true} : vector<2x128xf32> -> vector<2x128xf32>
      %124 = arith.mulf %58, %123 : vector<2x128xf32>
      %cst_46 = arith.constant 0.000000e+00 : f32
      %125 = vector.broadcast %cst_46 : f32 to vector<2x128xf32>
      %126 = arith.select %120, %124, %125 : vector<2x128xi1>, vector<2x128xf32>
      %cst_47 = arith.constant 0.708333313 : f32
      %127 = arith.mulf %11, %cst_47 : f32
      %128 = vector.broadcast %127 : f32 to vector<2x128xf32>
      %129 = arith.addf %118, %128 : vector<2x128xf32>
      %130 = math.floor %129 : vector<2x128xf32>
      %131 = arith.subf %129, %130 : vector<2x128xf32>
      %132 = vector.broadcast %14 : f32 to vector<2x128xf32>
      %133 = arith.mulf %126, %132 : vector<2x128xf32>
      %cst_48 = arith.constant 0.000000e+00 : f32
      %cst_49 = arith.constant 1.000000e+00 : f32
      %134 = vector.broadcast %cst_48 : f32 to vector<2x128xf32>
      %135 = arith.maximumf %134, %133 : vector<2x128xf32>
      %136 = vector.broadcast %cst_49 : f32 to vector<2x128xf32>
      %137 = arith.minimumf %136, %135 : vector<2x128xf32>
      %138 = vector.broadcast %17 : f32 to vector<2x128xf32>
      %139 = arith.mulf %55, %138 : vector<2x128xf32>
      %cst_50 = arith.constant 0.000000e+00 : f32
      %cst_51 = arith.constant 1.000000e+00 : f32
      %140 = vector.broadcast %cst_50 : f32 to vector<2x128xf32>
      %141 = arith.maximumf %140, %139 : vector<2x128xf32>
      %142 = vector.broadcast %cst_51 : f32 to vector<2x128xf32>
      %143 = arith.minimumf %142, %141 : vector<2x128xf32>
      %144 = arith.mulf %143, %137 : vector<2x128xf32>
      %cst_52 = arith.constant 6.000000e+00 : f32
      %145 = vector.broadcast %cst_52 : f32 to vector<2x128xf32>
      %146 = arith.mulf %131, %145 : vector<2x128xf32>
      %cst_53 = arith.constant 5.000000e+00 : f32
      %147 = vector.broadcast %cst_53 : f32 to vector<2x128xf32>
      %148 = arith.addf %147, %146 : vector<2x128xf32>
      %cst_54 = arith.constant 6.000000e+00 : f32
      %149 = vector.broadcast %cst_54 : f32 to vector<2x128xf32>
      %150 = arith.cmpf oge, %148, %149 : vector<2x128xf32>
      %cst_55 = arith.constant 6.000000e+00 : f32
      %151 = vector.broadcast %cst_55 : f32 to vector<2x128xf32>
      %152 = arith.subf %148, %151 : vector<2x128xf32>
      %153 = arith.select %150, %152, %148 : vector<2x128xi1>, vector<2x128xf32>
      %cst_56 = arith.constant 4.000000e+00 : f32
      %154 = vector.broadcast %cst_56 : f32 to vector<2x128xf32>
      %155 = arith.subf %154, %153 : vector<2x128xf32>
      %156 = arith.minimumf %153, %155 : vector<2x128xf32>
      %cst_57 = arith.constant 0.000000e+00 : f32
      %cst_58 = arith.constant 1.000000e+00 : f32
      %157 = vector.broadcast %cst_57 : f32 to vector<2x128xf32>
      %158 = arith.maximumf %157, %156 : vector<2x128xf32>
      %159 = vector.broadcast %cst_58 : f32 to vector<2x128xf32>
      %160 = arith.minimumf %159, %158 : vector<2x128xf32>
      %161 = arith.mulf %144, %160 : vector<2x128xf32>
      %162 = arith.subf %143, %161 : vector<2x128xf32>
      %cst_59 = arith.constant 3.000000e+00 : f32
      %163 = vector.broadcast %cst_59 : f32 to vector<2x128xf32>
      %164 = arith.addf %163, %146 : vector<2x128xf32>
      %cst_60 = arith.constant 6.000000e+00 : f32
      %165 = vector.broadcast %cst_60 : f32 to vector<2x128xf32>
      %166 = arith.cmpf oge, %164, %165 : vector<2x128xf32>
      %cst_61 = arith.constant 6.000000e+00 : f32
      %167 = vector.broadcast %cst_61 : f32 to vector<2x128xf32>
      %168 = arith.subf %164, %167 : vector<2x128xf32>
      %169 = arith.select %166, %168, %164 : vector<2x128xi1>, vector<2x128xf32>
      %cst_62 = arith.constant 4.000000e+00 : f32
      %170 = vector.broadcast %cst_62 : f32 to vector<2x128xf32>
      %171 = arith.subf %170, %169 : vector<2x128xf32>
      %172 = arith.minimumf %169, %171 : vector<2x128xf32>
      %cst_63 = arith.constant 0.000000e+00 : f32
      %cst_64 = arith.constant 1.000000e+00 : f32
      %173 = vector.broadcast %cst_63 : f32 to vector<2x128xf32>
      %174 = arith.maximumf %173, %172 : vector<2x128xf32>
      %175 = vector.broadcast %cst_64 : f32 to vector<2x128xf32>
      %176 = arith.minimumf %175, %174 : vector<2x128xf32>
      %177 = arith.mulf %144, %176 : vector<2x128xf32>
      %178 = arith.subf %143, %177 : vector<2x128xf32>
      %cst_65 = arith.constant 1.000000e+00 : f32
      %179 = vector.broadcast %cst_65 : f32 to vector<2x128xf32>
      %180 = arith.addf %179, %146 : vector<2x128xf32>
      %cst_66 = arith.constant 6.000000e+00 : f32
      %181 = vector.broadcast %cst_66 : f32 to vector<2x128xf32>
      %182 = arith.cmpf oge, %180, %181 : vector<2x128xf32>
      %cst_67 = arith.constant 6.000000e+00 : f32
      %183 = vector.broadcast %cst_67 : f32 to vector<2x128xf32>
      %184 = arith.subf %180, %183 : vector<2x128xf32>
      %185 = arith.select %182, %184, %180 : vector<2x128xi1>, vector<2x128xf32>
      %cst_68 = arith.constant 4.000000e+00 : f32
      %186 = vector.broadcast %cst_68 : f32 to vector<2x128xf32>
      %187 = arith.subf %186, %185 : vector<2x128xf32>
      %188 = arith.minimumf %185, %187 : vector<2x128xf32>
      %cst_69 = arith.constant 0.000000e+00 : f32
      %cst_70 = arith.constant 1.000000e+00 : f32
      %189 = vector.broadcast %cst_69 : f32 to vector<2x128xf32>
      %190 = arith.maximumf %189, %188 : vector<2x128xf32>
      %191 = vector.broadcast %cst_70 : f32 to vector<2x128xf32>
      %192 = arith.minimumf %191, %190 : vector<2x128xf32>
      %193 = arith.mulf %144, %192 : vector<2x128xf32>
      %194 = arith.subf %143, %193 : vector<2x128xf32>
      %cst_71 = arith.constant 1.000000e+00 : f32
      %195 = arith.subf %cst_71, %8 : f32
      %cst_72 = arith.constant 3.906250e-03 : f32
      %196 = arith.mulf %195, %cst_72 : f32
      %197 = vector.shape_cast %162 : vector<2x128xf32> to vector<1x2x128xf32>
      %cst_73 = arith.constant dense<0.000000e+00> : vector<1xf32>
      %198 = vector.multi_reduction <add>, %197, %cst_73 [1, 2] : vector<1x2x128xf32> to vector<1xf32>
      %199 = vector.shape_cast %198 : vector<1xf32> to vector<1x1x1xf32>
      %200 = vector.extract %199[0, 0, 0] : f32 from vector<1x1x1xf32>
      %201 = arith.mulf %200, %196 : f32
      %202 = vector.broadcast %8 : f32 to vector<2x128xf32>
      %203 = arith.mulf %162, %202 : vector<2x128xf32>
      %204 = vector.broadcast %201 : f32 to vector<2x128xf32>
      %205 = arith.addf %203, %204 : vector<2x128xf32>
      %cst_74 = arith.constant 0.000000e+00 : f32
      %cst_75 = arith.constant 1.000000e+00 : f32
      %206 = vector.broadcast %cst_74 : f32 to vector<2x128xf32>
      %207 = arith.maximumf %206, %205 : vector<2x128xf32>
      %208 = vector.broadcast %cst_75 : f32 to vector<2x128xf32>
      %209 = arith.minimumf %208, %207 : vector<2x128xf32>
      %210 = vector.shape_cast %178 : vector<2x128xf32> to vector<1x2x128xf32>
      %cst_76 = arith.constant dense<0.000000e+00> : vector<1xf32>
      %211 = vector.multi_reduction <add>, %210, %cst_76 [1, 2] : vector<1x2x128xf32> to vector<1xf32>
      %212 = vector.shape_cast %211 : vector<1xf32> to vector<1x1x1xf32>
      %213 = vector.extract %212[0, 0, 0] : f32 from vector<1x1x1xf32>
      %214 = arith.mulf %213, %196 : f32
      %215 = vector.broadcast %8 : f32 to vector<2x128xf32>
      %216 = arith.mulf %178, %215 : vector<2x128xf32>
      %217 = vector.broadcast %214 : f32 to vector<2x128xf32>
      %218 = arith.addf %216, %217 : vector<2x128xf32>
      %cst_77 = arith.constant 0.000000e+00 : f32
      %cst_78 = arith.constant 1.000000e+00 : f32
      %219 = vector.broadcast %cst_77 : f32 to vector<2x128xf32>
      %220 = arith.maximumf %219, %218 : vector<2x128xf32>
      %221 = vector.broadcast %cst_78 : f32 to vector<2x128xf32>
      %222 = arith.minimumf %221, %220 : vector<2x128xf32>
      %223 = vector.shape_cast %194 : vector<2x128xf32> to vector<1x2x128xf32>
      %cst_79 = arith.constant dense<0.000000e+00> : vector<1xf32>
      %224 = vector.multi_reduction <add>, %223, %cst_79 [1, 2] : vector<1x2x128xf32> to vector<1xf32>
      %225 = vector.shape_cast %224 : vector<1xf32> to vector<1x1x1xf32>
      %226 = vector.extract %225[0, 0, 0] : f32 from vector<1x1x1xf32>
      %227 = arith.mulf %226, %196 : f32
      %228 = vector.broadcast %8 : f32 to vector<2x128xf32>
      %229 = arith.mulf %194, %228 : vector<2x128xf32>
      %230 = vector.broadcast %227 : f32 to vector<2x128xf32>
      %231 = arith.addf %229, %230 : vector<2x128xf32>
      %cst_80 = arith.constant 0.000000e+00 : f32
      %cst_81 = arith.constant 1.000000e+00 : f32
      %232 = vector.broadcast %cst_80 : f32 to vector<2x128xf32>
      %233 = arith.maximumf %232, %231 : vector<2x128xf32>
      %234 = vector.broadcast %cst_81 : f32 to vector<2x128xf32>
      %235 = arith.minimumf %234, %233 : vector<2x128xf32>
      %c0_82 = arith.constant 0 : index
      %c0_83 = arith.constant 0 : index
      %c0_84 = arith.constant 0 : index
      %c0_85 = arith.constant 0 : index
      %236 = vector.load %arg3[%c0_82, %c0_83, %c0_84, %c0_85] : memref<2x3x2x128xf32, #tpu.memory_space<vmem>>, vector<1x1x2x128xf32>
      %237 = vector.shape_cast %236 : vector<1x1x2x128xf32> to vector<2x128xf32>
      %238 = vector.shape_cast %209 : vector<2x128xf32> to vector<1x1x2x128xf32>
      tpu.vector_store %arg3[%c0_82, %c0_83, %c0_84, %c0_85], %238 {strides = array<i32>} : memref<2x3x2x128xf32, #tpu.memory_space<vmem>>, vector<1x1x2x128xf32>,
      %c0_86 = arith.constant 0 : index
      %c1_87 = arith.constant 1 : index
      %c0_88 = arith.constant 0 : index
      %c0_89 = arith.constant 0 : index
      %239 = vector.load %arg3[%c0_86, %c1_87, %c0_88, %c0_89] : memref<2x3x2x128xf32, #tpu.memory_space<vmem>>, vector<1x1x2x128xf32>
      %240 = vector.shape_cast %239 : vector<1x1x2x128xf32> to vector<2x128xf32>
      %241 = vector.shape_cast %222 : vector<2x128xf32> to vector<1x1x2x128xf32>
      tpu.vector_store %arg3[%c0_86, %c1_87, %c0_88, %c0_89], %241 {strides = array<i32>} : memref<2x3x2x128xf32, #tpu.memory_space<vmem>>, vector<1x1x2x128xf32>,
      %c0_90 = arith.constant 0 : index
      %c2_91 = arith.constant 2 : index
      %c0_92 = arith.constant 0 : index
      %c0_93 = arith.constant 0 : index
      %242 = vector.load %arg3[%c0_90, %c2_91, %c0_92, %c0_93] : memref<2x3x2x128xf32, #tpu.memory_space<vmem>>, vector<1x1x2x128xf32>
      %243 = vector.shape_cast %242 : vector<1x1x2x128xf32> to vector<2x128xf32>
      %244 = vector.shape_cast %235 : vector<2x128xf32> to vector<1x1x2x128xf32>
      tpu.vector_store %arg3[%c0_90, %c2_91, %c0_92, %c0_93], %244 {strides = array<i32>} : memref<2x3x2x128xf32, #tpu.memory_space<vmem>>, vector<1x1x2x128xf32>,
    } else {
    }
    %c2_i32_5 = arith.constant 2 : i32
    %24 = arith.muli %arg0, %c2_i32_5 : i32
    %c1_i32_6 = arith.constant 1 : i32
    %25 = arith.addi %24, %c1_i32_6 : i32
    %c8_i32_7 = arith.constant 8 : i32
    %26 = arith.muli %25, %c8_i32_7 : i32
    %c0_i32_8 = arith.constant 0 : i32
    %27 = arith.addi %26, %c0_i32_8 : i32
    %28 = arith.index_cast %27 : i32 to index
    %29 = memref.load %arg1[%28] : memref<16xf32, #tpu.memory_space<smem>>
    %c1_i32_9 = arith.constant 1 : i32
    %30 = arith.addi %26, %c1_i32_9 : i32
    %31 = arith.index_cast %30 : i32 to index
    %32 = memref.load %arg1[%31] : memref<16xf32, #tpu.memory_space<smem>>
    %c2_i32_10 = arith.constant 2 : i32
    %33 = arith.addi %26, %c2_i32_10 : i32
    %34 = arith.index_cast %33 : i32 to index
    %35 = memref.load %arg1[%34] : memref<16xf32, #tpu.memory_space<smem>>
    %c3_i32_11 = arith.constant 3 : i32
    %36 = arith.addi %26, %c3_i32_11 : i32
    %37 = arith.index_cast %36 : i32 to index
    %38 = memref.load %arg1[%37] : memref<16xf32, #tpu.memory_space<smem>>
    %c4_i32_12 = arith.constant 4 : i32
    %39 = arith.addi %26, %c4_i32_12 : i32
    %40 = arith.index_cast %39 : i32 to index
    %41 = memref.load %arg1[%40] : memref<16xf32, #tpu.memory_space<smem>>
    %cst_13 = arith.constant 0.000000e+00 : f32
    %42 = arith.cmpf oeq, %29, %cst_13 : f32
    %43 = arith.extui %42 : i1 to i32
    %c0_i32_14 = arith.constant 0 : i32
    %44 = arith.cmpi ne, %43, %c0_i32_14 : i32
    scf.if %44 {
      %c1 = arith.constant 1 : index
      %c0 = arith.constant 0 : index
      %c0_17 = arith.constant 0 : index
      %c0_18 = arith.constant 0 : index
      %48 = vector.load %arg2[%c1, %c0, %c0_17, %c0_18] : memref<2x3x2x128xf32, #tpu.memory_space<vmem>>, vector<1x3x2x128xf32>
      %49 = vector.shape_cast %48 : vector<1x3x2x128xf32> to vector<3x2x128xf32>
      %c1_19 = arith.constant 1 : index
      %c0_20 = arith.constant 0 : index
      %c0_21 = arith.constant 0 : index
      %c0_22 = arith.constant 0 : index
      %50 = vector.load %arg3[%c1_19, %c0_20, %c0_21, %c0_22] : memref<2x3x2x128xf32, #tpu.memory_space<vmem>>, vector<1x3x2x128xf32>
      %51 = vector.shape_cast %50 : vector<1x3x2x128xf32> to vector<3x2x128xf32>
      %52 = vector.shape_cast %49 : vector<3x2x128xf32> to vector<1x3x2x128xf32>
      tpu.vector_store %arg3[%c1_19, %c0_20, %c0_21, %c0_22], %52 {strides = array<i32>} : memref<2x3x2x128xf32, #tpu.memory_space<vmem>>, vector<1x3x2x128xf32>,
    } else {
    }
    %cst_15 = arith.constant 0.000000e+00 : f32
    %45 = arith.cmpf one, %29, %cst_15 : f32
    %46 = arith.extui %45 : i1 to i32
    %c0_i32_16 = arith.constant 0 : i32
    %47 = arith.cmpi ne, %46, %c0_i32_16 : i32
    scf.if %47 {
      %c1 = arith.constant 1 : index
      %c0 = arith.constant 0 : index
      %c0_17 = arith.constant 0 : index
      %c0_18 = arith.constant 0 : index
      %48 = vector.load %arg2[%c1, %c0, %c0_17, %c0_18] : memref<2x3x2x128xf32, #tpu.memory_space<vmem>>, vector<1x1x2x128xf32>
      %49 = vector.shape_cast %48 : vector<1x1x2x128xf32> to vector<2x128xf32>
      %c1_19 = arith.constant 1 : index
      %c1_20 = arith.constant 1 : index
      %c0_21 = arith.constant 0 : index
      %c0_22 = arith.constant 0 : index
      %50 = vector.load %arg2[%c1_19, %c1_20, %c0_21, %c0_22] : memref<2x3x2x128xf32, #tpu.memory_space<vmem>>, vector<1x1x2x128xf32>
      %51 = vector.shape_cast %50 : vector<1x1x2x128xf32> to vector<2x128xf32>
      %c1_23 = arith.constant 1 : index
      %c2 = arith.constant 2 : index
      %c0_24 = arith.constant 0 : index
      %c0_25 = arith.constant 0 : index
      %52 = vector.load %arg2[%c1_23, %c2, %c0_24, %c0_25] : memref<2x3x2x128xf32, #tpu.memory_space<vmem>>, vector<1x1x2x128xf32>
      %53 = vector.shape_cast %52 : vector<1x1x2x128xf32> to vector<2x128xf32>
      %54 = arith.maximumf %49, %51 : vector<2x128xf32>
      %55 = arith.maximumf %54, %53 : vector<2x128xf32>
      %56 = arith.minimumf %49, %51 : vector<2x128xf32>
      %57 = arith.minimumf %56, %53 : vector<2x128xf32>
      %58 = arith.subf %55, %57 : vector<2x128xf32>
      %59 = arith.subf %51, %53 : vector<2x128xf32>
      %cst_26 = arith.constant 1.73205078 : f32
      %60 = vector.broadcast %cst_26 : f32 to vector<2x128xf32>
      %61 = arith.mulf %60, %59 : vector<2x128xf32>
      %cst_27 = arith.constant 2.000000e+00 : f32
      %62 = vector.broadcast %cst_27 : f32 to vector<2x128xf32>
      %63 = arith.mulf %62, %49 : vector<2x128xf32>
      %64 = arith.subf %63, %51 : vector<2x128xf32>
      %65 = arith.subf %64, %53 : vector<2x128xf32>
      %66 = math.absf %65 : vector<2x128xf32>
      %67 = math.absf %61 : vector<2x128xf32>
      %68 = arith.maximumf %66, %67 : vector<2x128xf32>
      %69 = arith.minimumf %66, %67 : vector<2x128xf32>
      %cst_28 = arith.constant 0.000000e+00 : f32
      %70 = vector.broadcast %cst_28 : f32 to vector<2x128xf32>
      %71 = arith.cmpf ogt, %68, %70 : vector<2x128xf32>
      %cst_29 = arith.constant 1.000000e+00 : f32
      %72 = vector.broadcast %cst_29 : f32 to vector<2x128xf32>
      %73 = arith.select %71, %68, %72 : vector<2x128xi1>, vector<2x128xf32>
      %74 = tpu.reciprocal %73 {approx = true} : vector<2x128xf32> -> vector<2x128xf32>
      %75 = arith.mulf %69, %74 : vector<2x128xf32>
      %cst_30 = arith.constant 0.000000e+00 : f32
      %76 = vector.broadcast %cst_30 : f32 to vector<2x128xf32>
      %77 = arith.select %71, %75, %76 : vector<2x128xi1>, vector<2x128xf32>
      %cst_31 = arith.constant 0.414213568 : f32
      %78 = vector.broadcast %cst_31 : f32 to vector<2x128xf32>
      %79 = arith.cmpf ogt, %77, %78 : vector<2x128xf32>
      %cst_32 = arith.constant 1.000000e+00 : f32
      %80 = vector.broadcast %cst_32 : f32 to vector<2x128xf32>
      %81 = arith.subf %77, %80 : vector<2x128xf32>
      %cst_33 = arith.constant 1.000000e+00 : f32
      %82 = vector.broadcast %cst_33 : f32 to vector<2x128xf32>
      %83 = arith.addf %77, %82 : vector<2x128xf32>
      %84 = tpu.reciprocal %83 {approx = true} : vector<2x128xf32> -> vector<2x128xf32>
      %85 = arith.mulf %81, %84 : vector<2x128xf32>
      %86 = arith.select %79, %85, %77 : vector<2x128xi1>, vector<2x128xf32>
      %87 = arith.mulf %86, %86 : vector<2x128xf32>
      %cst_34 = arith.constant -0.142857149 : f32
      %88 = vector.broadcast %cst_34 : f32 to vector<2x128xf32>
      %89 = arith.mulf %87, %88 : vector<2x128xf32>
      %cst_35 = arith.constant 2.000000e-01 : f32
      %90 = vector.broadcast %cst_35 : f32 to vector<2x128xf32>
      %91 = arith.addf %90, %89 : vector<2x128xf32>
      %92 = arith.mulf %87, %91 : vector<2x128xf32>
      %cst_36 = arith.constant -0.333333343 : f32
      %93 = vector.broadcast %cst_36 : f32 to vector<2x128xf32>
      %94 = arith.addf %93, %92 : vector<2x128xf32>
      %95 = arith.mulf %86, %87 : vector<2x128xf32>
      %96 = arith.mulf %95, %94 : vector<2x128xf32>
      %97 = arith.addf %86, %96 : vector<2x128xf32>
      %cst_37 = arith.constant 0.785398185 : f32
      %98 = vector.broadcast %cst_37 : f32 to vector<2x128xf32>
      %99 = arith.addf %98, %97 : vector<2x128xf32>
      %100 = arith.select %79, %99, %97 : vector<2x128xi1>, vector<2x128xf32>
      %101 = arith.cmpf ogt, %67, %66 : vector<2x128xf32>
      %cst_38 = arith.constant 1.57079637 : f32
      %102 = vector.broadcast %cst_38 : f32 to vector<2x128xf32>
      %103 = arith.subf %102, %100 : vector<2x128xf32>
      %104 = arith.select %101, %103, %100 : vector<2x128xi1>, vector<2x128xf32>
      %cst_39 = arith.constant 0.000000e+00 : f32
      %105 = vector.broadcast %cst_39 : f32 to vector<2x128xf32>
      %106 = arith.cmpf olt, %65, %105 : vector<2x128xf32>
      %cst_40 = arith.constant 3.14159274 : f32
      %107 = vector.broadcast %cst_40 : f32 to vector<2x128xf32>
      %108 = arith.subf %107, %104 : vector<2x128xf32>
      %109 = arith.select %106, %108, %104 : vector<2x128xi1>, vector<2x128xf32>
      %cst_41 = arith.constant 0.000000e+00 : f32
      %110 = vector.broadcast %cst_41 : f32 to vector<2x128xf32>
      %111 = arith.cmpf olt, %61, %110 : vector<2x128xf32>
      %cst_42 = arith.constant 0.000000e+00 : f32
      %112 = vector.broadcast %cst_42 : f32 to vector<2x128xf32>
      %113 = arith.subf %112, %109 : vector<2x128xf32>
      %114 = arith.select %111, %113, %109 : vector<2x128xi1>, vector<2x128xf32>
      %cst_43 = arith.constant 0.159154937 : f32
      %115 = vector.broadcast %cst_43 : f32 to vector<2x128xf32>
      %116 = arith.mulf %114, %115 : vector<2x128xf32>
      %117 = math.floor %116 : vector<2x128xf32>
      %118 = arith.subf %116, %117 : vector<2x128xf32>
      %cst_44 = arith.constant 0.000000e+00 : f32
      %119 = vector.broadcast %cst_44 : f32 to vector<2x128xf32>
      %120 = arith.cmpf ogt, %55, %119 : vector<2x128xf32>
      %cst_45 = arith.constant 1.000000e+00 : f32
      %121 = vector.broadcast %cst_45 : f32 to vector<2x128xf32>
      %122 = arith.select %120, %55, %121 : vector<2x128xi1>, vector<2x128xf32>
      %123 = tpu.reciprocal %122 {approx = true} : vector<2x128xf32> -> vector<2x128xf32>
      %124 = arith.mulf %58, %123 : vector<2x128xf32>
      %cst_46 = arith.constant 0.000000e+00 : f32
      %125 = vector.broadcast %cst_46 : f32 to vector<2x128xf32>
      %126 = arith.select %120, %124, %125 : vector<2x128xi1>, vector<2x128xf32>
      %cst_47 = arith.constant 0.708333313 : f32
      %127 = arith.mulf %35, %cst_47 : f32
      %128 = vector.broadcast %127 : f32 to vector<2x128xf32>
      %129 = arith.addf %118, %128 : vector<2x128xf32>
      %130 = math.floor %129 : vector<2x128xf32>
      %131 = arith.subf %129, %130 : vector<2x128xf32>
      %132 = vector.broadcast %38 : f32 to vector<2x128xf32>
      %133 = arith.mulf %126, %132 : vector<2x128xf32>
      %cst_48 = arith.constant 0.000000e+00 : f32
      %cst_49 = arith.constant 1.000000e+00 : f32
      %134 = vector.broadcast %cst_48 : f32 to vector<2x128xf32>
      %135 = arith.maximumf %134, %133 : vector<2x128xf32>
      %136 = vector.broadcast %cst_49 : f32 to vector<2x128xf32>
      %137 = arith.minimumf %136, %135 : vector<2x128xf32>
      %138 = vector.broadcast %41 : f32 to vector<2x128xf32>
      %139 = arith.mulf %55, %138 : vector<2x128xf32>
      %cst_50 = arith.constant 0.000000e+00 : f32
      %cst_51 = arith.constant 1.000000e+00 : f32
      %140 = vector.broadcast %cst_50 : f32 to vector<2x128xf32>
      %141 = arith.maximumf %140, %139 : vector<2x128xf32>
      %142 = vector.broadcast %cst_51 : f32 to vector<2x128xf32>
      %143 = arith.minimumf %142, %141 : vector<2x128xf32>
      %144 = arith.mulf %143, %137 : vector<2x128xf32>
      %cst_52 = arith.constant 6.000000e+00 : f32
      %145 = vector.broadcast %cst_52 : f32 to vector<2x128xf32>
      %146 = arith.mulf %131, %145 : vector<2x128xf32>
      %cst_53 = arith.constant 5.000000e+00 : f32
      %147 = vector.broadcast %cst_53 : f32 to vector<2x128xf32>
      %148 = arith.addf %147, %146 : vector<2x128xf32>
      %cst_54 = arith.constant 6.000000e+00 : f32
      %149 = vector.broadcast %cst_54 : f32 to vector<2x128xf32>
      %150 = arith.cmpf oge, %148, %149 : vector<2x128xf32>
      %cst_55 = arith.constant 6.000000e+00 : f32
      %151 = vector.broadcast %cst_55 : f32 to vector<2x128xf32>
      %152 = arith.subf %148, %151 : vector<2x128xf32>
      %153 = arith.select %150, %152, %148 : vector<2x128xi1>, vector<2x128xf32>
      %cst_56 = arith.constant 4.000000e+00 : f32
      %154 = vector.broadcast %cst_56 : f32 to vector<2x128xf32>
      %155 = arith.subf %154, %153 : vector<2x128xf32>
      %156 = arith.minimumf %153, %155 : vector<2x128xf32>
      %cst_57 = arith.constant 0.000000e+00 : f32
      %cst_58 = arith.constant 1.000000e+00 : f32
      %157 = vector.broadcast %cst_57 : f32 to vector<2x128xf32>
      %158 = arith.maximumf %157, %156 : vector<2x128xf32>
      %159 = vector.broadcast %cst_58 : f32 to vector<2x128xf32>
      %160 = arith.minimumf %159, %158 : vector<2x128xf32>
      %161 = arith.mulf %144, %160 : vector<2x128xf32>
      %162 = arith.subf %143, %161 : vector<2x128xf32>
      %cst_59 = arith.constant 3.000000e+00 : f32
      %163 = vector.broadcast %cst_59 : f32 to vector<2x128xf32>
      %164 = arith.addf %163, %146 : vector<2x128xf32>
      %cst_60 = arith.constant 6.000000e+00 : f32
      %165 = vector.broadcast %cst_60 : f32 to vector<2x128xf32>
      %166 = arith.cmpf oge, %164, %165 : vector<2x128xf32>
      %cst_61 = arith.constant 6.000000e+00 : f32
      %167 = vector.broadcast %cst_61 : f32 to vector<2x128xf32>
      %168 = arith.subf %164, %167 : vector<2x128xf32>
      %169 = arith.select %166, %168, %164 : vector<2x128xi1>, vector<2x128xf32>
      %cst_62 = arith.constant 4.000000e+00 : f32
      %170 = vector.broadcast %cst_62 : f32 to vector<2x128xf32>
      %171 = arith.subf %170, %169 : vector<2x128xf32>
      %172 = arith.minimumf %169, %171 : vector<2x128xf32>
      %cst_63 = arith.constant 0.000000e+00 : f32
      %cst_64 = arith.constant 1.000000e+00 : f32
      %173 = vector.broadcast %cst_63 : f32 to vector<2x128xf32>
      %174 = arith.maximumf %173, %172 : vector<2x128xf32>
      %175 = vector.broadcast %cst_64 : f32 to vector<2x128xf32>
      %176 = arith.minimumf %175, %174 : vector<2x128xf32>
      %177 = arith.mulf %144, %176 : vector<2x128xf32>
      %178 = arith.subf %143, %177 : vector<2x128xf32>
      %cst_65 = arith.constant 1.000000e+00 : f32
      %179 = vector.broadcast %cst_65 : f32 to vector<2x128xf32>
      %180 = arith.addf %179, %146 : vector<2x128xf32>
      %cst_66 = arith.constant 6.000000e+00 : f32
      %181 = vector.broadcast %cst_66 : f32 to vector<2x128xf32>
      %182 = arith.cmpf oge, %180, %181 : vector<2x128xf32>
      %cst_67 = arith.constant 6.000000e+00 : f32
      %183 = vector.broadcast %cst_67 : f32 to vector<2x128xf32>
      %184 = arith.subf %180, %183 : vector<2x128xf32>
      %185 = arith.select %182, %184, %180 : vector<2x128xi1>, vector<2x128xf32>
      %cst_68 = arith.constant 4.000000e+00 : f32
      %186 = vector.broadcast %cst_68 : f32 to vector<2x128xf32>
      %187 = arith.subf %186, %185 : vector<2x128xf32>
      %188 = arith.minimumf %185, %187 : vector<2x128xf32>
      %cst_69 = arith.constant 0.000000e+00 : f32
      %cst_70 = arith.constant 1.000000e+00 : f32
      %189 = vector.broadcast %cst_69 : f32 to vector<2x128xf32>
      %190 = arith.maximumf %189, %188 : vector<2x128xf32>
      %191 = vector.broadcast %cst_70 : f32 to vector<2x128xf32>
      %192 = arith.minimumf %191, %190 : vector<2x128xf32>
      %193 = arith.mulf %144, %192 : vector<2x128xf32>
      %194 = arith.subf %143, %193 : vector<2x128xf32>
      %cst_71 = arith.constant 1.000000e+00 : f32
      %195 = arith.subf %cst_71, %32 : f32
      %cst_72 = arith.constant 3.906250e-03 : f32
      %196 = arith.mulf %195, %cst_72 : f32
      %197 = vector.shape_cast %162 : vector<2x128xf32> to vector<1x2x128xf32>
      %cst_73 = arith.constant dense<0.000000e+00> : vector<1xf32>
      %198 = vector.multi_reduction <add>, %197, %cst_73 [1, 2] : vector<1x2x128xf32> to vector<1xf32>
      %199 = vector.shape_cast %198 : vector<1xf32> to vector<1x1x1xf32>
      %200 = vector.extract %199[0, 0, 0] : f32 from vector<1x1x1xf32>
      %201 = arith.mulf %200, %196 : f32
      %202 = vector.broadcast %32 : f32 to vector<2x128xf32>
      %203 = arith.mulf %162, %202 : vector<2x128xf32>
      %204 = vector.broadcast %201 : f32 to vector<2x128xf32>
      %205 = arith.addf %203, %204 : vector<2x128xf32>
      %cst_74 = arith.constant 0.000000e+00 : f32
      %cst_75 = arith.constant 1.000000e+00 : f32
      %206 = vector.broadcast %cst_74 : f32 to vector<2x128xf32>
      %207 = arith.maximumf %206, %205 : vector<2x128xf32>
      %208 = vector.broadcast %cst_75 : f32 to vector<2x128xf32>
      %209 = arith.minimumf %208, %207 : vector<2x128xf32>
      %210 = vector.shape_cast %178 : vector<2x128xf32> to vector<1x2x128xf32>
      %cst_76 = arith.constant dense<0.000000e+00> : vector<1xf32>
      %211 = vector.multi_reduction <add>, %210, %cst_76 [1, 2] : vector<1x2x128xf32> to vector<1xf32>
      %212 = vector.shape_cast %211 : vector<1xf32> to vector<1x1x1xf32>
      %213 = vector.extract %212[0, 0, 0] : f32 from vector<1x1x1xf32>
      %214 = arith.mulf %213, %196 : f32
      %215 = vector.broadcast %32 : f32 to vector<2x128xf32>
      %216 = arith.mulf %178, %215 : vector<2x128xf32>
      %217 = vector.broadcast %214 : f32 to vector<2x128xf32>
      %218 = arith.addf %216, %217 : vector<2x128xf32>
      %cst_77 = arith.constant 0.000000e+00 : f32
      %cst_78 = arith.constant 1.000000e+00 : f32
      %219 = vector.broadcast %cst_77 : f32 to vector<2x128xf32>
      %220 = arith.maximumf %219, %218 : vector<2x128xf32>
      %221 = vector.broadcast %cst_78 : f32 to vector<2x128xf32>
      %222 = arith.minimumf %221, %220 : vector<2x128xf32>
      %223 = vector.shape_cast %194 : vector<2x128xf32> to vector<1x2x128xf32>
      %cst_79 = arith.constant dense<0.000000e+00> : vector<1xf32>
      %224 = vector.multi_reduction <add>, %223, %cst_79 [1, 2] : vector<1x2x128xf32> to vector<1xf32>
      %225 = vector.shape_cast %224 : vector<1xf32> to vector<1x1x1xf32>
      %226 = vector.extract %225[0, 0, 0] : f32 from vector<1x1x1xf32>
      %227 = arith.mulf %226, %196 : f32
      %228 = vector.broadcast %32 : f32 to vector<2x128xf32>
      %229 = arith.mulf %194, %228 : vector<2x128xf32>
      %230 = vector.broadcast %227 : f32 to vector<2x128xf32>
      %231 = arith.addf %229, %230 : vector<2x128xf32>
      %cst_80 = arith.constant 0.000000e+00 : f32
      %cst_81 = arith.constant 1.000000e+00 : f32
      %232 = vector.broadcast %cst_80 : f32 to vector<2x128xf32>
      %233 = arith.maximumf %232, %231 : vector<2x128xf32>
      %234 = vector.broadcast %cst_81 : f32 to vector<2x128xf32>
      %235 = arith.minimumf %234, %233 : vector<2x128xf32>
      %c1_82 = arith.constant 1 : index
      %c0_83 = arith.constant 0 : index
      %c0_84 = arith.constant 0 : index
      %c0_85 = arith.constant 0 : index
      %236 = vector.load %arg3[%c1_82, %c0_83, %c0_84, %c0_85] : memref<2x3x2x128xf32, #tpu.memory_space<vmem>>, vector<1x1x2x128xf32>
      %237 = vector.shape_cast %236 : vector<1x1x2x128xf32> to vector<2x128xf32>
      %238 = vector.shape_cast %209 : vector<2x128xf32> to vector<1x1x2x128xf32>
      tpu.vector_store %arg3[%c1_82, %c0_83, %c0_84, %c0_85], %238 {strides = array<i32>} : memref<2x3x2x128xf32, #tpu.memory_space<vmem>>, vector<1x1x2x128xf32>,
      %c1_86 = arith.constant 1 : index
      %c1_87 = arith.constant 1 : index
      %c0_88 = arith.constant 0 : index
      %c0_89 = arith.constant 0 : index
      %239 = vector.load %arg3[%c1_86, %c1_87, %c0_88, %c0_89] : memref<2x3x2x128xf32, #tpu.memory_space<vmem>>, vector<1x1x2x128xf32>
      %240 = vector.shape_cast %239 : vector<1x1x2x128xf32> to vector<2x128xf32>
      %241 = vector.shape_cast %222 : vector<2x128xf32> to vector<1x1x2x128xf32>
      tpu.vector_store %arg3[%c1_86, %c1_87, %c0_88, %c0_89], %241 {strides = array<i32>} : memref<2x3x2x128xf32, #tpu.memory_space<vmem>>, vector<1x1x2x128xf32>,
      %c1_90 = arith.constant 1 : index
      %c2_91 = arith.constant 2 : index
      %c0_92 = arith.constant 0 : index
      %c0_93 = arith.constant 0 : index
      %242 = vector.load %arg3[%c1_90, %c2_91, %c0_92, %c0_93] : memref<2x3x2x128xf32, #tpu.memory_space<vmem>>, vector<1x1x2x128xf32>
      %243 = vector.shape_cast %242 : vector<1x1x2x128xf32> to vector<2x128xf32>
      %244 = vector.shape_cast %235 : vector<2x128xf32> to vector<1x1x2x128xf32>
      tpu.vector_store %arg3[%c1_90, %c2_91, %c0_92, %c0_93], %244 {strides = array<i32>} : memref<2x3x2x128xf32, #tpu.memory_space<vmem>>, vector<1x1x2x128xf32>,
    } else {
    }
    return
  }
  func.func @transform_0(%arg0: i32) -> i32 {
    %c0_i32 = arith.constant 0 : i32
    %c0_i32_0 = arith.constant 0 : i32
    return %c0_i32 : i32
  }
  func.func @transform_1(%arg0: i32) -> (i32, i32, i32, i32) {
    %c0_i32 = arith.constant 0 : i32
    %c0_i32_0 = arith.constant 0 : i32
    %c0_i32_1 = arith.constant 0 : i32
    %c0_i32_2 = arith.constant 0 : i32
    return %arg0, %c0_i32, %c0_i32_0, %c0_i32_1 : i32, i32, i32, i32
  }
  func.func @transform_2(%arg0: i32) -> (i32, i32, i32, i32) {
    %c0_i32 = arith.constant 0 : i32
    %c0_i32_0 = arith.constant 0 : i32
    %c0_i32_1 = arith.constant 0 : i32
    %c0_i32_2 = arith.constant 0 : i32
    return %arg0, %c0_i32, %c0_i32_0, %c0_i32_1 : i32, i32, i32, i32
  }
}

module attributes {stable_mosaic.version = 11 : i64} {
  func.func @_color_jitter_kernel(%arg0: i32, %arg1: memref<16xf32, #tpu.memory_space<smem>>, %arg2: memref<2x3x2x128xf32, #tpu.memory_space<vmem>>, %arg3: memref<2x3x2x128xf32, #tpu.memory_space<vmem>>) attributes {dimension_semantics = [#tpu.dimension_semantics<parallel>], iteration_bounds = array<i64: 1>, scalar_prefetch = 0 : i64, scratch_operands = 0 : i64, tpu.core_type = #tpu.core_type<tc>, window_params = [{transform_indices = @transform_0, window_bounds = array<i64: 16>}, {transform_indices = @transform_1, window_bounds = array<i64: 2, 3, 2, 128>}, {transform_indices = @transform_2, window_bounds = array<i64: 2, 3, 2, 128>}]} {
    %c2_i32 = arith.constant 2 : i32
    %0 = arith.muli %arg0, %c2_i32 : i32
    %c0_i32 = arith.constant 0 : i32
    %1 = arith.addi %0, %c0_i32 : i32
    %c8_i32 = arith.constant 8 : i32
    %2 = arith.muli %1, %c8_i32 : i32
    %c0_i32_0 = arith.constant 0 : i32
    %3 = arith.addi %2, %c0_i32_0 : i32
    %4 = arith.index_cast %3 : i32 to index
    %5 = memref.load %arg1[%4] : memref<16xf32, #tpu.memory_space<smem>>
    %c1_i32 = arith.constant 1 : i32
    %6 = arith.addi %2, %c1_i32 : i32
    %7 = arith.index_cast %6 : i32 to index
    %8 = memref.load %arg1[%7] : memref<16xf32, #tpu.memory_space<smem>>
    %c2_i32_1 = arith.constant 2 : i32
    %9 = arith.addi %2, %c2_i32_1 : i32
    %10 = arith.index_cast %9 : i32 to index
    %11 = memref.load %arg1[%10] : memref<16xf32, #tpu.memory_space<smem>>
    %c3_i32 = arith.constant 3 : i32
    %12 = arith.addi %2, %c3_i32 : i32
    %13 = arith.index_cast %12 : i32 to index
    %14 = memref.load %arg1[%13] : memref<16xf32, #tpu.memory_space<smem>>
    %c4_i32 = arith.constant 4 : i32
    %15 = arith.addi %2, %c4_i32 : i32
    %16 = arith.index_cast %15 : i32 to index
    %17 = memref.load %arg1[%16] : memref<16xf32, #tpu.memory_space<smem>>
    %cst = arith.constant 0.000000e+00 : f32
    %18 = arith.cmpf oeq, %5, %cst : f32
    %19 = arith.extui %18 : i1 to i32
    %c0_i32_2 = arith.constant 0 : i32
    %20 = arith.cmpi ne, %19, %c0_i32_2 : i32
    scf.if %20 {
      %c0 = arith.constant 0 : index
      %c0_17 = arith.constant 0 : index
      %c0_18 = arith.constant 0 : index
      %c0_19 = arith.constant 0 : index
      %48 = vector.load %arg2[%c0, %c0_17, %c0_18, %c0_19] : memref<2x3x2x128xf32, #tpu.memory_space<vmem>>, vector<1x3x2x128xf32>
      %49 = vector.shape_cast %48 : vector<1x3x2x128xf32> to vector<3x2x128xf32>
      %c0_20 = arith.constant 0 : index
      %c0_21 = arith.constant 0 : index
      %c0_22 = arith.constant 0 : index
      %c0_23 = arith.constant 0 : index
      %50 = vector.load %arg3[%c0_20, %c0_21, %c0_22, %c0_23] : memref<2x3x2x128xf32, #tpu.memory_space<vmem>>, vector<1x3x2x128xf32>
      %51 = vector.shape_cast %50 : vector<1x3x2x128xf32> to vector<3x2x128xf32>
      %52 = vector.shape_cast %49 : vector<3x2x128xf32> to vector<1x3x2x128xf32>
      tpu.vector_store %arg3[%c0_20, %c0_21, %c0_22, %c0_23], %52 {strides = array<i32>} : memref<2x3x2x128xf32, #tpu.memory_space<vmem>>, vector<1x3x2x128xf32>,
    } else {
    }
    %cst_3 = arith.constant 0.000000e+00 : f32
    %21 = arith.cmpf one, %5, %cst_3 : f32
    %22 = arith.extui %21 : i1 to i32
    %c0_i32_4 = arith.constant 0 : i32
    %23 = arith.cmpi ne, %22, %c0_i32_4 : i32
    scf.if %23 {
      %c0 = arith.constant 0 : index
      %c0_17 = arith.constant 0 : index
      %c0_18 = arith.constant 0 : index
      %c0_19 = arith.constant 0 : index
      %48 = vector.load %arg2[%c0, %c0_17, %c0_18, %c0_19] : memref<2x3x2x128xf32, #tpu.memory_space<vmem>>, vector<1x1x2x128xf32>
      %49 = vector.shape_cast %48 : vector<1x1x2x128xf32> to vector<2x128xf32>
      %c0_20 = arith.constant 0 : index
      %c1 = arith.constant 1 : index
      %c0_21 = arith.constant 0 : index
      %c0_22 = arith.constant 0 : index
      %50 = vector.load %arg2[%c0_20, %c1, %c0_21, %c0_22] : memref<2x3x2x128xf32, #tpu.memory_space<vmem>>, vector<1x1x2x128xf32>
      %51 = vector.shape_cast %50 : vector<1x1x2x128xf32> to vector<2x128xf32>
      %c0_23 = arith.constant 0 : index
      %c2 = arith.constant 2 : index
      %c0_24 = arith.constant 0 : index
      %c0_25 = arith.constant 0 : index
      %52 = vector.load %arg2[%c0_23, %c2, %c0_24, %c0_25] : memref<2x3x2x128xf32, #tpu.memory_space<vmem>>, vector<1x1x2x128xf32>
      %53 = vector.shape_cast %52 : vector<1x1x2x128xf32> to vector<2x128xf32>
      %cst_26 = arith.constant 1.000000e+00 : f32
      %54 = arith.subf %cst_26, %8 : f32
      %cst_27 = arith.constant 3.906250e-03 : f32
      %55 = arith.mulf %54, %cst_27 : f32
      %56 = vector.shape_cast %49 : vector<2x128xf32> to vector<1x2x128xf32>
      %cst_28 = arith.constant dense<0.000000e+00> : vector<1xf32>
      %57 = vector.multi_reduction <add>, %56, %cst_28 [1, 2] : vector<1x2x128xf32> to vector<1xf32>
      %58 = vector.shape_cast %57 : vector<1xf32> to vector<1x1x1xf32>
      %59 = vector.extract %58[0, 0, 0] : f32 from vector<1x1x1xf32>
      %60 = arith.mulf %59, %55 : f32
      %61 = vector.broadcast %8 : f32 to vector<2x128xf32>
      %62 = arith.mulf %49, %61 : vector<2x128xf32>
      %63 = vector.broadcast %60 : f32 to vector<2x128xf32>
      %64 = arith.addf %62, %63 : vector<2x128xf32>
      %cst_29 = arith.constant 0.000000e+00 : f32
      %cst_30 = arith.constant 1.000000e+00 : f32
      %65 = vector.broadcast %cst_29 : f32 to vector<2x128xf32>
      %66 = arith.maximumf %65, %64 : vector<2x128xf32>
      %67 = vector.broadcast %cst_30 : f32 to vector<2x128xf32>
      %68 = arith.minimumf %67, %66 : vector<2x128xf32>
      %69 = vector.shape_cast %51 : vector<2x128xf32> to vector<1x2x128xf32>
      %cst_31 = arith.constant dense<0.000000e+00> : vector<1xf32>
      %70 = vector.multi_reduction <add>, %69, %cst_31 [1, 2] : vector<1x2x128xf32> to vector<1xf32>
      %71 = vector.shape_cast %70 : vector<1xf32> to vector<1x1x1xf32>
      %72 = vector.extract %71[0, 0, 0] : f32 from vector<1x1x1xf32>
      %73 = arith.mulf %72, %55 : f32
      %74 = vector.broadcast %8 : f32 to vector<2x128xf32>
      %75 = arith.mulf %51, %74 : vector<2x128xf32>
      %76 = vector.broadcast %73 : f32 to vector<2x128xf32>
      %77 = arith.addf %75, %76 : vector<2x128xf32>
      %cst_32 = arith.constant 0.000000e+00 : f32
      %cst_33 = arith.constant 1.000000e+00 : f32
      %78 = vector.broadcast %cst_32 : f32 to vector<2x128xf32>
      %79 = arith.maximumf %78, %77 : vector<2x128xf32>
      %80 = vector.broadcast %cst_33 : f32 to vector<2x128xf32>
      %81 = arith.minimumf %80, %79 : vector<2x128xf32>
      %82 = vector.shape_cast %53 : vector<2x128xf32> to vector<1x2x128xf32>
      %cst_34 = arith.constant dense<0.000000e+00> : vector<1xf32>
      %83 = vector.multi_reduction <add>, %82, %cst_34 [1, 2] : vector<1x2x128xf32> to vector<1xf32>
      %84 = vector.shape_cast %83 : vector<1xf32> to vector<1x1x1xf32>
      %85 = vector.extract %84[0, 0, 0] : f32 from vector<1x1x1xf32>
      %86 = arith.mulf %85, %55 : f32
      %87 = vector.broadcast %8 : f32 to vector<2x128xf32>
      %88 = arith.mulf %53, %87 : vector<2x128xf32>
      %89 = vector.broadcast %86 : f32 to vector<2x128xf32>
      %90 = arith.addf %88, %89 : vector<2x128xf32>
      %cst_35 = arith.constant 0.000000e+00 : f32
      %cst_36 = arith.constant 1.000000e+00 : f32
      %91 = vector.broadcast %cst_35 : f32 to vector<2x128xf32>
      %92 = arith.maximumf %91, %90 : vector<2x128xf32>
      %93 = vector.broadcast %cst_36 : f32 to vector<2x128xf32>
      %94 = arith.minimumf %93, %92 : vector<2x128xf32>
      %95 = arith.maximumf %68, %81 : vector<2x128xf32>
      %96 = arith.maximumf %95, %94 : vector<2x128xf32>
      %97 = arith.minimumf %68, %81 : vector<2x128xf32>
      %98 = arith.minimumf %97, %94 : vector<2x128xf32>
      %99 = arith.subf %96, %98 : vector<2x128xf32>
      %100 = arith.subf %81, %94 : vector<2x128xf32>
      %cst_37 = arith.constant 1.73205078 : f32
      %101 = vector.broadcast %cst_37 : f32 to vector<2x128xf32>
      %102 = arith.mulf %101, %100 : vector<2x128xf32>
      %cst_38 = arith.constant 2.000000e+00 : f32
      %103 = vector.broadcast %cst_38 : f32 to vector<2x128xf32>
      %104 = arith.mulf %103, %68 : vector<2x128xf32>
      %105 = arith.subf %104, %81 : vector<2x128xf32>
      %106 = arith.subf %105, %94 : vector<2x128xf32>
      %107 = math.absf %106 : vector<2x128xf32>
      %108 = math.absf %102 : vector<2x128xf32>
      %109 = arith.maximumf %107, %108 : vector<2x128xf32>
      %110 = arith.minimumf %107, %108 : vector<2x128xf32>
      %cst_39 = arith.constant 0.000000e+00 : f32
      %111 = vector.broadcast %cst_39 : f32 to vector<2x128xf32>
      %112 = arith.cmpf ogt, %109, %111 : vector<2x128xf32>
      %cst_40 = arith.constant 1.000000e+00 : f32
      %113 = vector.broadcast %cst_40 : f32 to vector<2x128xf32>
      %114 = arith.select %112, %109, %113 : vector<2x128xi1>, vector<2x128xf32>
      %115 = tpu.reciprocal %114 {approx = true} : vector<2x128xf32> -> vector<2x128xf32>
      %116 = arith.mulf %110, %115 : vector<2x128xf32>
      %cst_41 = arith.constant 0.000000e+00 : f32
      %117 = vector.broadcast %cst_41 : f32 to vector<2x128xf32>
      %118 = arith.select %112, %116, %117 : vector<2x128xi1>, vector<2x128xf32>
      %cst_42 = arith.constant 0.414213568 : f32
      %119 = vector.broadcast %cst_42 : f32 to vector<2x128xf32>
      %120 = arith.cmpf ogt, %118, %119 : vector<2x128xf32>
      %cst_43 = arith.constant 1.000000e+00 : f32
      %121 = vector.broadcast %cst_43 : f32 to vector<2x128xf32>
      %122 = arith.subf %118, %121 : vector<2x128xf32>
      %cst_44 = arith.constant 1.000000e+00 : f32
      %123 = vector.broadcast %cst_44 : f32 to vector<2x128xf32>
      %124 = arith.addf %118, %123 : vector<2x128xf32>
      %125 = tpu.reciprocal %124 {approx = true} : vector<2x128xf32> -> vector<2x128xf32>
      %126 = arith.mulf %122, %125 : vector<2x128xf32>
      %127 = arith.select %120, %126, %118 : vector<2x128xi1>, vector<2x128xf32>
      %128 = arith.mulf %127, %127 : vector<2x128xf32>
      %cst_45 = arith.constant -0.142857149 : f32
      %129 = vector.broadcast %cst_45 : f32 to vector<2x128xf32>
      %130 = arith.mulf %128, %129 : vector<2x128xf32>
      %cst_46 = arith.constant 2.000000e-01 : f32
      %131 = vector.broadcast %cst_46 : f32 to vector<2x128xf32>
      %132 = arith.addf %131, %130 : vector<2x128xf32>
      %133 = arith.mulf %128, %132 : vector<2x128xf32>
      %cst_47 = arith.constant -0.333333343 : f32
      %134 = vector.broadcast %cst_47 : f32 to vector<2x128xf32>
      %135 = arith.addf %134, %133 : vector<2x128xf32>
      %136 = arith.mulf %127, %128 : vector<2x128xf32>
      %137 = arith.mulf %136, %135 : vector<2x128xf32>
      %138 = arith.addf %127, %137 : vector<2x128xf32>
      %cst_48 = arith.constant 0.785398185 : f32
      %139 = vector.broadcast %cst_48 : f32 to vector<2x128xf32>
      %140 = arith.addf %139, %138 : vector<2x128xf32>
      %141 = arith.select %120, %140, %138 : vector<2x128xi1>, vector<2x128xf32>
      %142 = arith.cmpf ogt, %108, %107 : vector<2x128xf32>
      %cst_49 = arith.constant 1.57079637 : f32
      %143 = vector.broadcast %cst_49 : f32 to vector<2x128xf32>
      %144 = arith.subf %143, %141 : vector<2x128xf32>
      %145 = arith.select %142, %144, %141 : vector<2x128xi1>, vector<2x128xf32>
      %cst_50 = arith.constant 0.000000e+00 : f32
      %146 = vector.broadcast %cst_50 : f32 to vector<2x128xf32>
      %147 = arith.cmpf olt, %106, %146 : vector<2x128xf32>
      %cst_51 = arith.constant 3.14159274 : f32
      %148 = vector.broadcast %cst_51 : f32 to vector<2x128xf32>
      %149 = arith.subf %148, %145 : vector<2x128xf32>
      %150 = arith.select %147, %149, %145 : vector<2x128xi1>, vector<2x128xf32>
      %cst_52 = arith.constant 0.000000e+00 : f32
      %151 = vector.broadcast %cst_52 : f32 to vector<2x128xf32>
      %152 = arith.cmpf olt, %102, %151 : vector<2x128xf32>
      %cst_53 = arith.constant 0.000000e+00 : f32
      %153 = vector.broadcast %cst_53 : f32 to vector<2x128xf32>
      %154 = arith.subf %153, %150 : vector<2x128xf32>
      %155 = arith.select %152, %154, %150 : vector<2x128xi1>, vector<2x128xf32>
      %cst_54 = arith.constant 0.159154937 : f32
      %156 = vector.broadcast %cst_54 : f32 to vector<2x128xf32>
      %157 = arith.mulf %155, %156 : vector<2x128xf32>
      %158 = math.floor %157 : vector<2x128xf32>
      %159 = arith.subf %157, %158 : vector<2x128xf32>
      %cst_55 = arith.constant 0.000000e+00 : f32
      %160 = vector.broadcast %cst_55 : f32 to vector<2x128xf32>
      %161 = arith.cmpf ogt, %96, %160 : vector<2x128xf32>
      %cst_56 = arith.constant 1.000000e+00 : f32
      %162 = vector.broadcast %cst_56 : f32 to vector<2x128xf32>
      %163 = arith.select %161, %96, %162 : vector<2x128xi1>, vector<2x128xf32>
      %164 = tpu.reciprocal %163 {approx = true} : vector<2x128xf32> -> vector<2x128xf32>
      %165 = arith.mulf %99, %164 : vector<2x128xf32>
      %cst_57 = arith.constant 0.000000e+00 : f32
      %166 = vector.broadcast %cst_57 : f32 to vector<2x128xf32>
      %167 = arith.select %161, %165, %166 : vector<2x128xi1>, vector<2x128xf32>
      %cst_58 = arith.constant 0.708333313 : f32
      %168 = arith.mulf %11, %cst_58 : f32
      %169 = vector.broadcast %168 : f32 to vector<2x128xf32>
      %170 = arith.addf %159, %169 : vector<2x128xf32>
      %171 = math.floor %170 : vector<2x128xf32>
      %172 = arith.subf %170, %171 : vector<2x128xf32>
      %173 = vector.broadcast %14 : f32 to vector<2x128xf32>
      %174 = arith.mulf %167, %173 : vector<2x128xf32>
      %cst_59 = arith.constant 0.000000e+00 : f32
      %cst_60 = arith.constant 1.000000e+00 : f32
      %175 = vector.broadcast %cst_59 : f32 to vector<2x128xf32>
      %176 = arith.maximumf %175, %174 : vector<2x128xf32>
      %177 = vector.broadcast %cst_60 : f32 to vector<2x128xf32>
      %178 = arith.minimumf %177, %176 : vector<2x128xf32>
      %179 = vector.broadcast %17 : f32 to vector<2x128xf32>
      %180 = arith.mulf %96, %179 : vector<2x128xf32>
      %cst_61 = arith.constant 0.000000e+00 : f32
      %cst_62 = arith.constant 1.000000e+00 : f32
      %181 = vector.broadcast %cst_61 : f32 to vector<2x128xf32>
      %182 = arith.maximumf %181, %180 : vector<2x128xf32>
      %183 = vector.broadcast %cst_62 : f32 to vector<2x128xf32>
      %184 = arith.minimumf %183, %182 : vector<2x128xf32>
      %185 = arith.mulf %184, %178 : vector<2x128xf32>
      %cst_63 = arith.constant 6.000000e+00 : f32
      %186 = vector.broadcast %cst_63 : f32 to vector<2x128xf32>
      %187 = arith.mulf %172, %186 : vector<2x128xf32>
      %cst_64 = arith.constant 5.000000e+00 : f32
      %188 = vector.broadcast %cst_64 : f32 to vector<2x128xf32>
      %189 = arith.addf %188, %187 : vector<2x128xf32>
      %cst_65 = arith.constant 6.000000e+00 : f32
      %190 = vector.broadcast %cst_65 : f32 to vector<2x128xf32>
      %191 = arith.cmpf oge, %189, %190 : vector<2x128xf32>
      %cst_66 = arith.constant 6.000000e+00 : f32
      %192 = vector.broadcast %cst_66 : f32 to vector<2x128xf32>
      %193 = arith.subf %189, %192 : vector<2x128xf32>
      %194 = arith.select %191, %193, %189 : vector<2x128xi1>, vector<2x128xf32>
      %cst_67 = arith.constant 4.000000e+00 : f32
      %195 = vector.broadcast %cst_67 : f32 to vector<2x128xf32>
      %196 = arith.subf %195, %194 : vector<2x128xf32>
      %197 = arith.minimumf %194, %196 : vector<2x128xf32>
      %cst_68 = arith.constant 0.000000e+00 : f32
      %cst_69 = arith.constant 1.000000e+00 : f32
      %198 = vector.broadcast %cst_68 : f32 to vector<2x128xf32>
      %199 = arith.maximumf %198, %197 : vector<2x128xf32>
      %200 = vector.broadcast %cst_69 : f32 to vector<2x128xf32>
      %201 = arith.minimumf %200, %199 : vector<2x128xf32>
      %202 = arith.mulf %185, %201 : vector<2x128xf32>
      %203 = arith.subf %184, %202 : vector<2x128xf32>
      %cst_70 = arith.constant 3.000000e+00 : f32
      %204 = vector.broadcast %cst_70 : f32 to vector<2x128xf32>
      %205 = arith.addf %204, %187 : vector<2x128xf32>
      %cst_71 = arith.constant 6.000000e+00 : f32
      %206 = vector.broadcast %cst_71 : f32 to vector<2x128xf32>
      %207 = arith.cmpf oge, %205, %206 : vector<2x128xf32>
      %cst_72 = arith.constant 6.000000e+00 : f32
      %208 = vector.broadcast %cst_72 : f32 to vector<2x128xf32>
      %209 = arith.subf %205, %208 : vector<2x128xf32>
      %210 = arith.select %207, %209, %205 : vector<2x128xi1>, vector<2x128xf32>
      %cst_73 = arith.constant 4.000000e+00 : f32
      %211 = vector.broadcast %cst_73 : f32 to vector<2x128xf32>
      %212 = arith.subf %211, %210 : vector<2x128xf32>
      %213 = arith.minimumf %210, %212 : vector<2x128xf32>
      %cst_74 = arith.constant 0.000000e+00 : f32
      %cst_75 = arith.constant 1.000000e+00 : f32
      %214 = vector.broadcast %cst_74 : f32 to vector<2x128xf32>
      %215 = arith.maximumf %214, %213 : vector<2x128xf32>
      %216 = vector.broadcast %cst_75 : f32 to vector<2x128xf32>
      %217 = arith.minimumf %216, %215 : vector<2x128xf32>
      %218 = arith.mulf %185, %217 : vector<2x128xf32>
      %219 = arith.subf %184, %218 : vector<2x128xf32>
      %cst_76 = arith.constant 1.000000e+00 : f32
      %220 = vector.broadcast %cst_76 : f32 to vector<2x128xf32>
      %221 = arith.addf %220, %187 : vector<2x128xf32>
      %cst_77 = arith.constant 6.000000e+00 : f32
      %222 = vector.broadcast %cst_77 : f32 to vector<2x128xf32>
      %223 = arith.cmpf oge, %221, %222 : vector<2x128xf32>
      %cst_78 = arith.constant 6.000000e+00 : f32
      %224 = vector.broadcast %cst_78 : f32 to vector<2x128xf32>
      %225 = arith.subf %221, %224 : vector<2x128xf32>
      %226 = arith.select %223, %225, %221 : vector<2x128xi1>, vector<2x128xf32>
      %cst_79 = arith.constant 4.000000e+00 : f32
      %227 = vector.broadcast %cst_79 : f32 to vector<2x128xf32>
      %228 = arith.subf %227, %226 : vector<2x128xf32>
      %229 = arith.minimumf %226, %228 : vector<2x128xf32>
      %cst_80 = arith.constant 0.000000e+00 : f32
      %cst_81 = arith.constant 1.000000e+00 : f32
      %230 = vector.broadcast %cst_80 : f32 to vector<2x128xf32>
      %231 = arith.maximumf %230, %229 : vector<2x128xf32>
      %232 = vector.broadcast %cst_81 : f32 to vector<2x128xf32>
      %233 = arith.minimumf %232, %231 : vector<2x128xf32>
      %234 = arith.mulf %185, %233 : vector<2x128xf32>
      %235 = arith.subf %184, %234 : vector<2x128xf32>
      %c0_82 = arith.constant 0 : index
      %c0_83 = arith.constant 0 : index
      %c0_84 = arith.constant 0 : index
      %c0_85 = arith.constant 0 : index
      %236 = vector.load %arg3[%c0_82, %c0_83, %c0_84, %c0_85] : memref<2x3x2x128xf32, #tpu.memory_space<vmem>>, vector<1x1x2x128xf32>
      %237 = vector.shape_cast %236 : vector<1x1x2x128xf32> to vector<2x128xf32>
      %238 = vector.shape_cast %203 : vector<2x128xf32> to vector<1x1x2x128xf32>
      tpu.vector_store %arg3[%c0_82, %c0_83, %c0_84, %c0_85], %238 {strides = array<i32>} : memref<2x3x2x128xf32, #tpu.memory_space<vmem>>, vector<1x1x2x128xf32>,
      %c0_86 = arith.constant 0 : index
      %c1_87 = arith.constant 1 : index
      %c0_88 = arith.constant 0 : index
      %c0_89 = arith.constant 0 : index
      %239 = vector.load %arg3[%c0_86, %c1_87, %c0_88, %c0_89] : memref<2x3x2x128xf32, #tpu.memory_space<vmem>>, vector<1x1x2x128xf32>
      %240 = vector.shape_cast %239 : vector<1x1x2x128xf32> to vector<2x128xf32>
      %241 = vector.shape_cast %219 : vector<2x128xf32> to vector<1x1x2x128xf32>
      tpu.vector_store %arg3[%c0_86, %c1_87, %c0_88, %c0_89], %241 {strides = array<i32>} : memref<2x3x2x128xf32, #tpu.memory_space<vmem>>, vector<1x1x2x128xf32>,
      %c0_90 = arith.constant 0 : index
      %c2_91 = arith.constant 2 : index
      %c0_92 = arith.constant 0 : index
      %c0_93 = arith.constant 0 : index
      %242 = vector.load %arg3[%c0_90, %c2_91, %c0_92, %c0_93] : memref<2x3x2x128xf32, #tpu.memory_space<vmem>>, vector<1x1x2x128xf32>
      %243 = vector.shape_cast %242 : vector<1x1x2x128xf32> to vector<2x128xf32>
      %244 = vector.shape_cast %235 : vector<2x128xf32> to vector<1x1x2x128xf32>
      tpu.vector_store %arg3[%c0_90, %c2_91, %c0_92, %c0_93], %244 {strides = array<i32>} : memref<2x3x2x128xf32, #tpu.memory_space<vmem>>, vector<1x1x2x128xf32>,
    } else {
    }
    %c2_i32_5 = arith.constant 2 : i32
    %24 = arith.muli %arg0, %c2_i32_5 : i32
    %c1_i32_6 = arith.constant 1 : i32
    %25 = arith.addi %24, %c1_i32_6 : i32
    %c8_i32_7 = arith.constant 8 : i32
    %26 = arith.muli %25, %c8_i32_7 : i32
    %c0_i32_8 = arith.constant 0 : i32
    %27 = arith.addi %26, %c0_i32_8 : i32
    %28 = arith.index_cast %27 : i32 to index
    %29 = memref.load %arg1[%28] : memref<16xf32, #tpu.memory_space<smem>>
    %c1_i32_9 = arith.constant 1 : i32
    %30 = arith.addi %26, %c1_i32_9 : i32
    %31 = arith.index_cast %30 : i32 to index
    %32 = memref.load %arg1[%31] : memref<16xf32, #tpu.memory_space<smem>>
    %c2_i32_10 = arith.constant 2 : i32
    %33 = arith.addi %26, %c2_i32_10 : i32
    %34 = arith.index_cast %33 : i32 to index
    %35 = memref.load %arg1[%34] : memref<16xf32, #tpu.memory_space<smem>>
    %c3_i32_11 = arith.constant 3 : i32
    %36 = arith.addi %26, %c3_i32_11 : i32
    %37 = arith.index_cast %36 : i32 to index
    %38 = memref.load %arg1[%37] : memref<16xf32, #tpu.memory_space<smem>>
    %c4_i32_12 = arith.constant 4 : i32
    %39 = arith.addi %26, %c4_i32_12 : i32
    %40 = arith.index_cast %39 : i32 to index
    %41 = memref.load %arg1[%40] : memref<16xf32, #tpu.memory_space<smem>>
    %cst_13 = arith.constant 0.000000e+00 : f32
    %42 = arith.cmpf oeq, %29, %cst_13 : f32
    %43 = arith.extui %42 : i1 to i32
    %c0_i32_14 = arith.constant 0 : i32
    %44 = arith.cmpi ne, %43, %c0_i32_14 : i32
    scf.if %44 {
      %c1 = arith.constant 1 : index
      %c0 = arith.constant 0 : index
      %c0_17 = arith.constant 0 : index
      %c0_18 = arith.constant 0 : index
      %48 = vector.load %arg2[%c1, %c0, %c0_17, %c0_18] : memref<2x3x2x128xf32, #tpu.memory_space<vmem>>, vector<1x3x2x128xf32>
      %49 = vector.shape_cast %48 : vector<1x3x2x128xf32> to vector<3x2x128xf32>
      %c1_19 = arith.constant 1 : index
      %c0_20 = arith.constant 0 : index
      %c0_21 = arith.constant 0 : index
      %c0_22 = arith.constant 0 : index
      %50 = vector.load %arg3[%c1_19, %c0_20, %c0_21, %c0_22] : memref<2x3x2x128xf32, #tpu.memory_space<vmem>>, vector<1x3x2x128xf32>
      %51 = vector.shape_cast %50 : vector<1x3x2x128xf32> to vector<3x2x128xf32>
      %52 = vector.shape_cast %49 : vector<3x2x128xf32> to vector<1x3x2x128xf32>
      tpu.vector_store %arg3[%c1_19, %c0_20, %c0_21, %c0_22], %52 {strides = array<i32>} : memref<2x3x2x128xf32, #tpu.memory_space<vmem>>, vector<1x3x2x128xf32>,
    } else {
    }
    %cst_15 = arith.constant 0.000000e+00 : f32
    %45 = arith.cmpf one, %29, %cst_15 : f32
    %46 = arith.extui %45 : i1 to i32
    %c0_i32_16 = arith.constant 0 : i32
    %47 = arith.cmpi ne, %46, %c0_i32_16 : i32
    scf.if %47 {
      %c1 = arith.constant 1 : index
      %c0 = arith.constant 0 : index
      %c0_17 = arith.constant 0 : index
      %c0_18 = arith.constant 0 : index
      %48 = vector.load %arg2[%c1, %c0, %c0_17, %c0_18] : memref<2x3x2x128xf32, #tpu.memory_space<vmem>>, vector<1x1x2x128xf32>
      %49 = vector.shape_cast %48 : vector<1x1x2x128xf32> to vector<2x128xf32>
      %c1_19 = arith.constant 1 : index
      %c1_20 = arith.constant 1 : index
      %c0_21 = arith.constant 0 : index
      %c0_22 = arith.constant 0 : index
      %50 = vector.load %arg2[%c1_19, %c1_20, %c0_21, %c0_22] : memref<2x3x2x128xf32, #tpu.memory_space<vmem>>, vector<1x1x2x128xf32>
      %51 = vector.shape_cast %50 : vector<1x1x2x128xf32> to vector<2x128xf32>
      %c1_23 = arith.constant 1 : index
      %c2 = arith.constant 2 : index
      %c0_24 = arith.constant 0 : index
      %c0_25 = arith.constant 0 : index
      %52 = vector.load %arg2[%c1_23, %c2, %c0_24, %c0_25] : memref<2x3x2x128xf32, #tpu.memory_space<vmem>>, vector<1x1x2x128xf32>
      %53 = vector.shape_cast %52 : vector<1x1x2x128xf32> to vector<2x128xf32>
      %cst_26 = arith.constant 1.000000e+00 : f32
      %54 = arith.subf %cst_26, %32 : f32
      %cst_27 = arith.constant 3.906250e-03 : f32
      %55 = arith.mulf %54, %cst_27 : f32
      %56 = vector.shape_cast %49 : vector<2x128xf32> to vector<1x2x128xf32>
      %cst_28 = arith.constant dense<0.000000e+00> : vector<1xf32>
      %57 = vector.multi_reduction <add>, %56, %cst_28 [1, 2] : vector<1x2x128xf32> to vector<1xf32>
      %58 = vector.shape_cast %57 : vector<1xf32> to vector<1x1x1xf32>
      %59 = vector.extract %58[0, 0, 0] : f32 from vector<1x1x1xf32>
      %60 = arith.mulf %59, %55 : f32
      %61 = vector.broadcast %32 : f32 to vector<2x128xf32>
      %62 = arith.mulf %49, %61 : vector<2x128xf32>
      %63 = vector.broadcast %60 : f32 to vector<2x128xf32>
      %64 = arith.addf %62, %63 : vector<2x128xf32>
      %cst_29 = arith.constant 0.000000e+00 : f32
      %cst_30 = arith.constant 1.000000e+00 : f32
      %65 = vector.broadcast %cst_29 : f32 to vector<2x128xf32>
      %66 = arith.maximumf %65, %64 : vector<2x128xf32>
      %67 = vector.broadcast %cst_30 : f32 to vector<2x128xf32>
      %68 = arith.minimumf %67, %66 : vector<2x128xf32>
      %69 = vector.shape_cast %51 : vector<2x128xf32> to vector<1x2x128xf32>
      %cst_31 = arith.constant dense<0.000000e+00> : vector<1xf32>
      %70 = vector.multi_reduction <add>, %69, %cst_31 [1, 2] : vector<1x2x128xf32> to vector<1xf32>
      %71 = vector.shape_cast %70 : vector<1xf32> to vector<1x1x1xf32>
      %72 = vector.extract %71[0, 0, 0] : f32 from vector<1x1x1xf32>
      %73 = arith.mulf %72, %55 : f32
      %74 = vector.broadcast %32 : f32 to vector<2x128xf32>
      %75 = arith.mulf %51, %74 : vector<2x128xf32>
      %76 = vector.broadcast %73 : f32 to vector<2x128xf32>
      %77 = arith.addf %75, %76 : vector<2x128xf32>
      %cst_32 = arith.constant 0.000000e+00 : f32
      %cst_33 = arith.constant 1.000000e+00 : f32
      %78 = vector.broadcast %cst_32 : f32 to vector<2x128xf32>
      %79 = arith.maximumf %78, %77 : vector<2x128xf32>
      %80 = vector.broadcast %cst_33 : f32 to vector<2x128xf32>
      %81 = arith.minimumf %80, %79 : vector<2x128xf32>
      %82 = vector.shape_cast %53 : vector<2x128xf32> to vector<1x2x128xf32>
      %cst_34 = arith.constant dense<0.000000e+00> : vector<1xf32>
      %83 = vector.multi_reduction <add>, %82, %cst_34 [1, 2] : vector<1x2x128xf32> to vector<1xf32>
      %84 = vector.shape_cast %83 : vector<1xf32> to vector<1x1x1xf32>
      %85 = vector.extract %84[0, 0, 0] : f32 from vector<1x1x1xf32>
      %86 = arith.mulf %85, %55 : f32
      %87 = vector.broadcast %32 : f32 to vector<2x128xf32>
      %88 = arith.mulf %53, %87 : vector<2x128xf32>
      %89 = vector.broadcast %86 : f32 to vector<2x128xf32>
      %90 = arith.addf %88, %89 : vector<2x128xf32>
      %cst_35 = arith.constant 0.000000e+00 : f32
      %cst_36 = arith.constant 1.000000e+00 : f32
      %91 = vector.broadcast %cst_35 : f32 to vector<2x128xf32>
      %92 = arith.maximumf %91, %90 : vector<2x128xf32>
      %93 = vector.broadcast %cst_36 : f32 to vector<2x128xf32>
      %94 = arith.minimumf %93, %92 : vector<2x128xf32>
      %95 = arith.maximumf %68, %81 : vector<2x128xf32>
      %96 = arith.maximumf %95, %94 : vector<2x128xf32>
      %97 = arith.minimumf %68, %81 : vector<2x128xf32>
      %98 = arith.minimumf %97, %94 : vector<2x128xf32>
      %99 = arith.subf %96, %98 : vector<2x128xf32>
      %100 = arith.subf %81, %94 : vector<2x128xf32>
      %cst_37 = arith.constant 1.73205078 : f32
      %101 = vector.broadcast %cst_37 : f32 to vector<2x128xf32>
      %102 = arith.mulf %101, %100 : vector<2x128xf32>
      %cst_38 = arith.constant 2.000000e+00 : f32
      %103 = vector.broadcast %cst_38 : f32 to vector<2x128xf32>
      %104 = arith.mulf %103, %68 : vector<2x128xf32>
      %105 = arith.subf %104, %81 : vector<2x128xf32>
      %106 = arith.subf %105, %94 : vector<2x128xf32>
      %107 = math.absf %106 : vector<2x128xf32>
      %108 = math.absf %102 : vector<2x128xf32>
      %109 = arith.maximumf %107, %108 : vector<2x128xf32>
      %110 = arith.minimumf %107, %108 : vector<2x128xf32>
      %cst_39 = arith.constant 0.000000e+00 : f32
      %111 = vector.broadcast %cst_39 : f32 to vector<2x128xf32>
      %112 = arith.cmpf ogt, %109, %111 : vector<2x128xf32>
      %cst_40 = arith.constant 1.000000e+00 : f32
      %113 = vector.broadcast %cst_40 : f32 to vector<2x128xf32>
      %114 = arith.select %112, %109, %113 : vector<2x128xi1>, vector<2x128xf32>
      %115 = tpu.reciprocal %114 {approx = true} : vector<2x128xf32> -> vector<2x128xf32>
      %116 = arith.mulf %110, %115 : vector<2x128xf32>
      %cst_41 = arith.constant 0.000000e+00 : f32
      %117 = vector.broadcast %cst_41 : f32 to vector<2x128xf32>
      %118 = arith.select %112, %116, %117 : vector<2x128xi1>, vector<2x128xf32>
      %cst_42 = arith.constant 0.414213568 : f32
      %119 = vector.broadcast %cst_42 : f32 to vector<2x128xf32>
      %120 = arith.cmpf ogt, %118, %119 : vector<2x128xf32>
      %cst_43 = arith.constant 1.000000e+00 : f32
      %121 = vector.broadcast %cst_43 : f32 to vector<2x128xf32>
      %122 = arith.subf %118, %121 : vector<2x128xf32>
      %cst_44 = arith.constant 1.000000e+00 : f32
      %123 = vector.broadcast %cst_44 : f32 to vector<2x128xf32>
      %124 = arith.addf %118, %123 : vector<2x128xf32>
      %125 = tpu.reciprocal %124 {approx = true} : vector<2x128xf32> -> vector<2x128xf32>
      %126 = arith.mulf %122, %125 : vector<2x128xf32>
      %127 = arith.select %120, %126, %118 : vector<2x128xi1>, vector<2x128xf32>
      %128 = arith.mulf %127, %127 : vector<2x128xf32>
      %cst_45 = arith.constant -0.142857149 : f32
      %129 = vector.broadcast %cst_45 : f32 to vector<2x128xf32>
      %130 = arith.mulf %128, %129 : vector<2x128xf32>
      %cst_46 = arith.constant 2.000000e-01 : f32
      %131 = vector.broadcast %cst_46 : f32 to vector<2x128xf32>
      %132 = arith.addf %131, %130 : vector<2x128xf32>
      %133 = arith.mulf %128, %132 : vector<2x128xf32>
      %cst_47 = arith.constant -0.333333343 : f32
      %134 = vector.broadcast %cst_47 : f32 to vector<2x128xf32>
      %135 = arith.addf %134, %133 : vector<2x128xf32>
      %136 = arith.mulf %127, %128 : vector<2x128xf32>
      %137 = arith.mulf %136, %135 : vector<2x128xf32>
      %138 = arith.addf %127, %137 : vector<2x128xf32>
      %cst_48 = arith.constant 0.785398185 : f32
      %139 = vector.broadcast %cst_48 : f32 to vector<2x128xf32>
      %140 = arith.addf %139, %138 : vector<2x128xf32>
      %141 = arith.select %120, %140, %138 : vector<2x128xi1>, vector<2x128xf32>
      %142 = arith.cmpf ogt, %108, %107 : vector<2x128xf32>
      %cst_49 = arith.constant 1.57079637 : f32
      %143 = vector.broadcast %cst_49 : f32 to vector<2x128xf32>
      %144 = arith.subf %143, %141 : vector<2x128xf32>
      %145 = arith.select %142, %144, %141 : vector<2x128xi1>, vector<2x128xf32>
      %cst_50 = arith.constant 0.000000e+00 : f32
      %146 = vector.broadcast %cst_50 : f32 to vector<2x128xf32>
      %147 = arith.cmpf olt, %106, %146 : vector<2x128xf32>
      %cst_51 = arith.constant 3.14159274 : f32
      %148 = vector.broadcast %cst_51 : f32 to vector<2x128xf32>
      %149 = arith.subf %148, %145 : vector<2x128xf32>
      %150 = arith.select %147, %149, %145 : vector<2x128xi1>, vector<2x128xf32>
      %cst_52 = arith.constant 0.000000e+00 : f32
      %151 = vector.broadcast %cst_52 : f32 to vector<2x128xf32>
      %152 = arith.cmpf olt, %102, %151 : vector<2x128xf32>
      %cst_53 = arith.constant 0.000000e+00 : f32
      %153 = vector.broadcast %cst_53 : f32 to vector<2x128xf32>
      %154 = arith.subf %153, %150 : vector<2x128xf32>
      %155 = arith.select %152, %154, %150 : vector<2x128xi1>, vector<2x128xf32>
      %cst_54 = arith.constant 0.159154937 : f32
      %156 = vector.broadcast %cst_54 : f32 to vector<2x128xf32>
      %157 = arith.mulf %155, %156 : vector<2x128xf32>
      %158 = math.floor %157 : vector<2x128xf32>
      %159 = arith.subf %157, %158 : vector<2x128xf32>
      %cst_55 = arith.constant 0.000000e+00 : f32
      %160 = vector.broadcast %cst_55 : f32 to vector<2x128xf32>
      %161 = arith.cmpf ogt, %96, %160 : vector<2x128xf32>
      %cst_56 = arith.constant 1.000000e+00 : f32
      %162 = vector.broadcast %cst_56 : f32 to vector<2x128xf32>
      %163 = arith.select %161, %96, %162 : vector<2x128xi1>, vector<2x128xf32>
      %164 = tpu.reciprocal %163 {approx = true} : vector<2x128xf32> -> vector<2x128xf32>
      %165 = arith.mulf %99, %164 : vector<2x128xf32>
      %cst_57 = arith.constant 0.000000e+00 : f32
      %166 = vector.broadcast %cst_57 : f32 to vector<2x128xf32>
      %167 = arith.select %161, %165, %166 : vector<2x128xi1>, vector<2x128xf32>
      %cst_58 = arith.constant 0.708333313 : f32
      %168 = arith.mulf %35, %cst_58 : f32
      %169 = vector.broadcast %168 : f32 to vector<2x128xf32>
      %170 = arith.addf %159, %169 : vector<2x128xf32>
      %171 = math.floor %170 : vector<2x128xf32>
      %172 = arith.subf %170, %171 : vector<2x128xf32>
      %173 = vector.broadcast %38 : f32 to vector<2x128xf32>
      %174 = arith.mulf %167, %173 : vector<2x128xf32>
      %cst_59 = arith.constant 0.000000e+00 : f32
      %cst_60 = arith.constant 1.000000e+00 : f32
      %175 = vector.broadcast %cst_59 : f32 to vector<2x128xf32>
      %176 = arith.maximumf %175, %174 : vector<2x128xf32>
      %177 = vector.broadcast %cst_60 : f32 to vector<2x128xf32>
      %178 = arith.minimumf %177, %176 : vector<2x128xf32>
      %179 = vector.broadcast %41 : f32 to vector<2x128xf32>
      %180 = arith.mulf %96, %179 : vector<2x128xf32>
      %cst_61 = arith.constant 0.000000e+00 : f32
      %cst_62 = arith.constant 1.000000e+00 : f32
      %181 = vector.broadcast %cst_61 : f32 to vector<2x128xf32>
      %182 = arith.maximumf %181, %180 : vector<2x128xf32>
      %183 = vector.broadcast %cst_62 : f32 to vector<2x128xf32>
      %184 = arith.minimumf %183, %182 : vector<2x128xf32>
      %185 = arith.mulf %184, %178 : vector<2x128xf32>
      %cst_63 = arith.constant 6.000000e+00 : f32
      %186 = vector.broadcast %cst_63 : f32 to vector<2x128xf32>
      %187 = arith.mulf %172, %186 : vector<2x128xf32>
      %cst_64 = arith.constant 5.000000e+00 : f32
      %188 = vector.broadcast %cst_64 : f32 to vector<2x128xf32>
      %189 = arith.addf %188, %187 : vector<2x128xf32>
      %cst_65 = arith.constant 6.000000e+00 : f32
      %190 = vector.broadcast %cst_65 : f32 to vector<2x128xf32>
      %191 = arith.cmpf oge, %189, %190 : vector<2x128xf32>
      %cst_66 = arith.constant 6.000000e+00 : f32
      %192 = vector.broadcast %cst_66 : f32 to vector<2x128xf32>
      %193 = arith.subf %189, %192 : vector<2x128xf32>
      %194 = arith.select %191, %193, %189 : vector<2x128xi1>, vector<2x128xf32>
      %cst_67 = arith.constant 4.000000e+00 : f32
      %195 = vector.broadcast %cst_67 : f32 to vector<2x128xf32>
      %196 = arith.subf %195, %194 : vector<2x128xf32>
      %197 = arith.minimumf %194, %196 : vector<2x128xf32>
      %cst_68 = arith.constant 0.000000e+00 : f32
      %cst_69 = arith.constant 1.000000e+00 : f32
      %198 = vector.broadcast %cst_68 : f32 to vector<2x128xf32>
      %199 = arith.maximumf %198, %197 : vector<2x128xf32>
      %200 = vector.broadcast %cst_69 : f32 to vector<2x128xf32>
      %201 = arith.minimumf %200, %199 : vector<2x128xf32>
      %202 = arith.mulf %185, %201 : vector<2x128xf32>
      %203 = arith.subf %184, %202 : vector<2x128xf32>
      %cst_70 = arith.constant 3.000000e+00 : f32
      %204 = vector.broadcast %cst_70 : f32 to vector<2x128xf32>
      %205 = arith.addf %204, %187 : vector<2x128xf32>
      %cst_71 = arith.constant 6.000000e+00 : f32
      %206 = vector.broadcast %cst_71 : f32 to vector<2x128xf32>
      %207 = arith.cmpf oge, %205, %206 : vector<2x128xf32>
      %cst_72 = arith.constant 6.000000e+00 : f32
      %208 = vector.broadcast %cst_72 : f32 to vector<2x128xf32>
      %209 = arith.subf %205, %208 : vector<2x128xf32>
      %210 = arith.select %207, %209, %205 : vector<2x128xi1>, vector<2x128xf32>
      %cst_73 = arith.constant 4.000000e+00 : f32
      %211 = vector.broadcast %cst_73 : f32 to vector<2x128xf32>
      %212 = arith.subf %211, %210 : vector<2x128xf32>
      %213 = arith.minimumf %210, %212 : vector<2x128xf32>
      %cst_74 = arith.constant 0.000000e+00 : f32
      %cst_75 = arith.constant 1.000000e+00 : f32
      %214 = vector.broadcast %cst_74 : f32 to vector<2x128xf32>
      %215 = arith.maximumf %214, %213 : vector<2x128xf32>
      %216 = vector.broadcast %cst_75 : f32 to vector<2x128xf32>
      %217 = arith.minimumf %216, %215 : vector<2x128xf32>
      %218 = arith.mulf %185, %217 : vector<2x128xf32>
      %219 = arith.subf %184, %218 : vector<2x128xf32>
      %cst_76 = arith.constant 1.000000e+00 : f32
      %220 = vector.broadcast %cst_76 : f32 to vector<2x128xf32>
      %221 = arith.addf %220, %187 : vector<2x128xf32>
      %cst_77 = arith.constant 6.000000e+00 : f32
      %222 = vector.broadcast %cst_77 : f32 to vector<2x128xf32>
      %223 = arith.cmpf oge, %221, %222 : vector<2x128xf32>
      %cst_78 = arith.constant 6.000000e+00 : f32
      %224 = vector.broadcast %cst_78 : f32 to vector<2x128xf32>
      %225 = arith.subf %221, %224 : vector<2x128xf32>
      %226 = arith.select %223, %225, %221 : vector<2x128xi1>, vector<2x128xf32>
      %cst_79 = arith.constant 4.000000e+00 : f32
      %227 = vector.broadcast %cst_79 : f32 to vector<2x128xf32>
      %228 = arith.subf %227, %226 : vector<2x128xf32>
      %229 = arith.minimumf %226, %228 : vector<2x128xf32>
      %cst_80 = arith.constant 0.000000e+00 : f32
      %cst_81 = arith.constant 1.000000e+00 : f32
      %230 = vector.broadcast %cst_80 : f32 to vector<2x128xf32>
      %231 = arith.maximumf %230, %229 : vector<2x128xf32>
      %232 = vector.broadcast %cst_81 : f32 to vector<2x128xf32>
      %233 = arith.minimumf %232, %231 : vector<2x128xf32>
      %234 = arith.mulf %185, %233 : vector<2x128xf32>
      %235 = arith.subf %184, %234 : vector<2x128xf32>
      %c1_82 = arith.constant 1 : index
      %c0_83 = arith.constant 0 : index
      %c0_84 = arith.constant 0 : index
      %c0_85 = arith.constant 0 : index
      %236 = vector.load %arg3[%c1_82, %c0_83, %c0_84, %c0_85] : memref<2x3x2x128xf32, #tpu.memory_space<vmem>>, vector<1x1x2x128xf32>
      %237 = vector.shape_cast %236 : vector<1x1x2x128xf32> to vector<2x128xf32>
      %238 = vector.shape_cast %203 : vector<2x128xf32> to vector<1x1x2x128xf32>
      tpu.vector_store %arg3[%c1_82, %c0_83, %c0_84, %c0_85], %238 {strides = array<i32>} : memref<2x3x2x128xf32, #tpu.memory_space<vmem>>, vector<1x1x2x128xf32>,
      %c1_86 = arith.constant 1 : index
      %c1_87 = arith.constant 1 : index
      %c0_88 = arith.constant 0 : index
      %c0_89 = arith.constant 0 : index
      %239 = vector.load %arg3[%c1_86, %c1_87, %c0_88, %c0_89] : memref<2x3x2x128xf32, #tpu.memory_space<vmem>>, vector<1x1x2x128xf32>
      %240 = vector.shape_cast %239 : vector<1x1x2x128xf32> to vector<2x128xf32>
      %241 = vector.shape_cast %219 : vector<2x128xf32> to vector<1x1x2x128xf32>
      tpu.vector_store %arg3[%c1_86, %c1_87, %c0_88, %c0_89], %241 {strides = array<i32>} : memref<2x3x2x128xf32, #tpu.memory_space<vmem>>, vector<1x1x2x128xf32>,
      %c1_90 = arith.constant 1 : index
      %c2_91 = arith.constant 2 : index
      %c0_92 = arith.constant 0 : index
      %c0_93 = arith.constant 0 : index
      %242 = vector.load %arg3[%c1_90, %c2_91, %c0_92, %c0_93] : memref<2x3x2x128xf32, #tpu.memory_space<vmem>>, vector<1x1x2x128xf32>
      %243 = vector.shape_cast %242 : vector<1x1x2x128xf32> to vector<2x128xf32>
      %244 = vector.shape_cast %235 : vector<2x128xf32> to vector<1x1x2x128xf32>
      tpu.vector_store %arg3[%c1_90, %c2_91, %c0_92, %c0_93], %244 {strides = array<i32>} : memref<2x3x2x128xf32, #tpu.memory_space<vmem>>, vector<1x1x2x128xf32>,
    } else {
    }
    return
  }
  func.func @transform_0(%arg0: i32) -> i32 {
    %c0_i32 = arith.constant 0 : i32
    %c0_i32_0 = arith.constant 0 : i32
    return %c0_i32 : i32
  }
  func.func @transform_1(%arg0: i32) -> (i32, i32, i32, i32) {
    %c0_i32 = arith.constant 0 : i32
    %c0_i32_0 = arith.constant 0 : i32
    %c0_i32_1 = arith.constant 0 : i32
    %c0_i32_2 = arith.constant 0 : i32
    return %arg0, %c0_i32, %c0_i32_0, %c0_i32_1 : i32, i32, i32, i32
  }
  func.func @transform_2(%arg0: i32) -> (i32, i32, i32, i32) {
    %c0_i32 = arith.constant 0 : i32
    %c0_i32_0 = arith.constant 0 : i32
    %c0_i32_1 = arith.constant 0 : i32
    %c0_i32_2 = arith.constant 0 : i32
    return %arg0, %c0_i32, %c0_i32_0, %c0_i32_1 : i32, i32, i32, i32
  }
}

</mosaic_0001>

<bundles_post_ra>
// kernel: branch_0_fun.1
= control target key start
LH: loop header
LB: loop body
LE: loop exit
PB: predicated region body
PF: predicated region fallthrough
CT: control target
= control target key end

     0   :  { %7 = vsyncpa [#allocation3], 0  ;;  %s473_s12 = smov [#allocation2]   ;;  %s582_s0 = inlined_call_operand.vmem [shape: f32[16], index: 0, kind: input, shape index: {}]   ;;  %s583_s1 = inlined_call_operand.vmem [shape: f32[2,3,2,128], index: 1, kind: input, shape index: {}]   ;;  %s584_s2 = inlined_call_operand.vmem [shape: f32[2,3,2,128], index: 2, kind: output, shape index: {}]  }
   0x1   :  { %s13_s11 = sshll.u32 %s582_s0, 4  ;;  %s14_s11 = int_to_ptr.vmem [resolvable:$true] %s13_s11 }
   0x2   :  { %16 = dma.vmem_to_smem %s14_s11, 16, %s473_s12, [#allocation3]  }
   0x3   :  { %471 = dma.done.wait [#allocation3], 16  }
   0x4   :  { %472 = vsyncadd [#allocation3], 4294967280 }
   0x5   :  { %23 = sfence }
   0x6   :  { %s25_s13 = sld [smem:[#allocation2]] }
   0x7   :  { %s492_s14 = sld [smem:[#allocation2 + $0x1]] }
   0x8   :  { %s494_s15 = sld [smem:[#allocation2 + $0x2]] }
   0x9   :  { %s496_s16 = sld [smem:[#allocation2 + $0x3]] }
   0xa   :  { %s498_s17 = sld [smem:[#allocation2 + $0x4]] }
   0xc   :  { %p34_p0 = scmp.eq.f32.partialorder %s25_s13, 0.0 }
   0xd   :  { %v38_v0 = vld [vmem:[%s583_s1] sm:$0xf] (%p34_p0)   ;;  %v40_v1 = vld [vmem:[%s583_s1 + $0x4] sm:$0x3] (%p34_p0) }
   0xe   :  { %37 = sbr.rel (!%p34_p0) target bundleno = 19 (0x13), region = 17  ;;  %41 = vst [vmem:[%s584_s2] sm:$0xf] (%p34_p0), %v38_v0  }
   0xf   :  { %43 = vst [vmem:[%s584_s2 + $0x4] sm:$0x3] (%p34_p0), %v40_v1 }
  0x13 PF:  { %p44_p1 = scmp.ne.f32.partialorder %s25_s13, 0.0 }
  0x14   :  { %v48_v2 = vld [vmem:[%s583_s1] sm:$0x3] (%p44_p1)  ;;  %v405_v3 = vld [vmem:[%s583_s1 + $0x2] sm:$0x3] (%p44_p1)  ;;  %v406_v4 = vld [vmem:[%s583_s1 + $0x4] sm:$0x3] (%p44_p1)  ;;  %v114_v52 = vstv (%p44_p1), %s498_s17 }
  0x15   :  { %47 = sbr.rel (!%p44_p1) target bundleno = 310 (0x136), region = 21  ;;  %v55_v5 = vmin.f32 (%p44_p1), %v48_v2, %v405_v3  ;;  %v58_v6 = vsub.f32 (%p44_p1), %v405_v3, %v406_v4  ;;  %v60_v7 = vmul.f32 (%p44_p1), 2.0, %v48_v2  ;;  %v53_v30 = vmax.f32 (%p44_p1), %v48_v2, %v405_v3  ;;  %s150_s4 = ssub.f32 (%p44_p1), 1.0, %s492_s14 }
  0x16   :  { %s105_s3 = smul.f32 (%p44_p1), 0.7083333, %s494_s15  ;;  %v110_v55 = vstv (%p44_p1), %s496_s16  ;;  %vm152_vm9 = vcmask (%p44_p1), 1041408  }
  0x17   :  { %v56_v8 = vmin.f32 (%p44_p1), %v55_v5, %v406_v4  ;;  %v59_v9 = vmul.f32 (%p44_p1), 1.7320508, %v58_v6  ;;  %v61_v10 = vsub.f32 (%p44_p1), %v60_v7, %v405_v3  ;;  %v54_v33 = vmax.f32 (%p44_p1), %v53_v30, %v406_v4  ;;  %s151_s5 = smul.f32 (%p44_p1), 0.00390625, %s150_s4 }
  0x18   :  { %v106_v48 = vstv (%p44_p1), %s105_s3 }
  0x19   :  { %v62_v11 = vsub.f32 (%p44_p1), %v61_v10, %v406_v4  ;;  %v64_v12 = vand.u32 (%p44_p1), 2147483647, %v59_v9  ;;  %vm100_vm2 = vcmp.gt.f32.partialorder (%p44_p1), %v54_v33, 0.0  ;;  %vm94_vm5 = vcmp.lt.f32.partialorder (%p44_p1), %v59_v9, 0.0 }
  0x1a   :  { %v101_v38 = vsel %vm100_vm2, %v54_v33, 1.0  ;;  %v57_v44 = vsub.f32 %v54_v33, %v56_v8  ;;  %v115_v57 = vmul.f32 %v114_v52, %v54_v33  ;;  %v164_v52 = vstv %s492_s14 }
  0x1b   :  { %v63_v13 = vand.u32 2147483647, %v62_v11  ;;  %vm91_vm4 = vcmp.lt.f32.partialorder %v62_v11, 0.0 }
  0x1c   :  { %v116_v60 = vmax.f32 %v115_v57, 0.0 }
  0x1d   :  { %v65_v14 = vmax.f32 %v63_v13, %v64_v12  ;;  %v66_v16 = vmin.f32 %v63_v13, %v64_v12  ;;  %vm88_vm3 = vcmp.gt.f32.partialorder %v64_v12, %v63_v13 }
  0x1e   :  { %v117_v4 = vmin.f32 %v116_v60, 1.0 }
  0x1f   :  { %vm67_vm0 = vcmp.gt.f32.partialorder %v65_v14, 0.0 }
  0x20   :  { %v68_v15 = vsel %vm67_vm0, %v65_v14, 1.0 }
  0x21   :  { %447 = vrcp.f32 %v68_v15 }
  0x27   :  { %v448_v17 = vpop.eup %447 }
  0x28   :  { %v70_v18 = vmul.f32 %v448_v17, %v66_v16 }
  0x2a   :  { %v71_v19 = vsel %vm67_vm0, %v70_v18, 0.0 }
  0x2b   :  { %v74_v20 = vadd.f32 1.0, %v71_v19  ;;  %v407_v21 = vadd.f32 -1.0, %v71_v19  ;;  %vm72_vm1 = vcmp.gt.f32.partialorder %v71_v19, 0.41421357 }
  0x2d   :  { %449 = vrcp.f32 %v74_v20 }
  0x2e   :  { %451 = vrcp.f32 %v101_v38 }
  0x33   :  { %v450_v22 = vpop.eup %449 }
  0x34   :  { %v76_v23 = vmul.f32 %v450_v22, %v407_v21  ;;  %v452_v46 = vpop.eup %451 }
  0x35   :  { %v103_v50 = vmul.f32 %v452_v46, %v57_v44 }
  0x36   :  { %v77_v24 = vsel %vm72_vm1, %v76_v23, %v71_v19 }
  0x37   :  { %v78_v25 = vmul.f32 %v77_v24, %v77_v24  ;;  %v104_v53 = vsel %vm100_vm2, %v103_v50, 0.0 }
  0x38   :  { %v111_v58 = vmul.f32 %v110_v55, %v104_v53 }
  0x39   :  { %v79_v26 = vmul.f32 -0.14285715, %v78_v25  ;;  %v83_v29 = vmul.f32 %v78_v25, %v77_v24 }
  0x3a   :  { %v112_v0 = vmax.f32 %v111_v58, 0.0 }
  0x3b   :  { %v80_v27 = vadd.f32 0.2, %v79_v26 }
  0x3c   :  { %v113_v7 = vmin.f32 %v112_v0, 1.0 }
  0x3d   :  { %v81_v28 = vmul.f32 %v80_v27, %v78_v25 }
  0x3e   :  { %v118_v15 = vmul.f32 %v117_v4, %v113_v7 }
  0x3f   :  { %v82_v31 = vadd.f32 -0.33333334, %v81_v28 }
  0x41   :  { %v84_v32 = vmul.f32 %v83_v29, %v82_v31 }
  0x43   :  { %v85_v34 = vadd.f32 %v84_v32, %v77_v24 }
  0x45   :  { %v86_v35 = vadd.f32 0.7853982, %v85_v34 }
  0x47   :  { %v87_v36 = vsel %vm72_vm1, %v86_v35, %v85_v34 }
  0x48   :  { %v89_v37 = vsub.f32 1.5707964, %v87_v36 }
  0x4a   :  { %v90_v39 = vsel %vm88_vm3, %v89_v37, %v87_v36 }
  0x4b   :  { %v92_v40 = vsub.f32 3.1415927, %v90_v39 }
  0x4d   :  { %v93_v41 = vsel %vm91_vm4, %v92_v40, %v90_v39 }
  0x4e   :  { %v95_v42 = vsub.f32 0.0, %v93_v41 }
  0x50   :  { %v96_v43 = vsel %vm94_vm5, %v95_v42, %v93_v41 }
  0x51   :  { %v97_v45 = vmul.f32 0.15915494, %v96_v43 }
  0x53   :  { %v98_v47 = vfloor.f32 %v97_v45 }
  0x55   :  { %v99_v49 = vsub.f32 %v97_v45, %v98_v47 }
  0x57   :  { %v107_v51 = vadd.f32 %v106_v48, %v99_v49 }
  0x59   :  { %v108_v54 = vfloor.f32 %v107_v51 }
  0x5b   :  { %v109_v56 = vsub.f32 %v107_v51, %v108_v54 }
  0x5d   :  { %v119_v59 = vmul.f32 6.0, %v109_v56 }
  0x5f   :  { %v120_v61 = vadd.f32 5.0, %v119_v59  ;;  %v140_v62 = vadd.f32 1.0, %v119_v59  ;;  %v130_v63 = vadd.f32 3.0, %v119_v59 }
  0x61   :  { %vm121_vm6 = vcmp.ge.f32.partialorder %v120_v61, 6.0  ;;  %v408_v1 = vadd.f32 -6.0, %v120_v61  ;;  %vm141_vm7 = vcmp.ge.f32.partialorder %v140_v62, 6.0  ;;  %v410_v2 = vadd.f32 -6.0, %v140_v62 }
  0x62   :  { %vm131_vm8 = vcmp.ge.f32.partialorder %v130_v63, 6.0  ;;  %v409_v3 = vadd.f32 -6.0, %v130_v63 }
  0x63   :  { %v123_v5 = vsel %vm121_vm6, %v408_v1, %v120_v61  ;;  %v143_v6 = vsel %vm141_vm7, %v410_v2, %v140_v62 }
  0x64   :  { %v124_v8 = vsub.f32 4.0, %v123_v5  ;;  %v144_v9 = vsub.f32 4.0, %v143_v6  ;;  %v133_v10 = vsel %vm131_vm8, %v409_v3, %v130_v63 }
  0x65   :  { %v134_v11 = vsub.f32 4.0, %v133_v10 }
  0x66   :  { %v125_v12 = vmin.f32 %v123_v5, %v124_v8  ;;  %v145_v13 = vmin.f32 %v143_v6, %v144_v9 }
  0x67   :  { %v135_v14 = vmin.f32 %v133_v10, %v134_v11 }
  0x68   :  { %v126_v16 = vmax.f32 %v125_v12, 0.0  ;;  %v146_v17 = vmax.f32 %v145_v13, 0.0 }
  0x69   :  { %v136_v18 = vmax.f32 %v135_v14, 0.0 }
  0x6a   :  { %v127_v19 = vmin.f32 %v126_v16, 1.0  ;;  %v147_v20 = vmin.f32 %v146_v17, 1.0 }
  0x6b   :  { %v137_v21 = vmin.f32 %v136_v18, 1.0 }
  0x6c   :  { %v128_v22 = vmul.f32 %v127_v19, %v118_v15  ;;  %v148_v23 = vmul.f32 %v147_v20, %v118_v15 }
  0x6d   :  { %v138_v26 = vmul.f32 %v137_v21, %v118_v15 }
  0x6e   :  { %v129_v24 = vsub.f32 %v117_v4, %v128_v22  ;;  %v149_v25 = vsub.f32 %v117_v4, %v148_v23 }
  0x6f   :  { %v139_v29 = vsub.f32 %v117_v4, %v138_v26 }
  0x70   :  { %v153_v27 = vsel %vm152_vm9, %v129_v24, 0.0  ;;  %v186_v28 = vsel %vm152_vm9, %v149_v25, 0.0  ;;  %v165_v53 = vmul.f32 %v164_v52, %v129_v24  ;;  %v197_v59 = vmul.f32 %v164_v52, %v149_v25 }
  0x71   :  { %154 = vadd.xlane.f32.xlu0 %v153_v27  ;;  %187 = vadd.xlane.f32.xlu1 %v186_v28  ;;  %v170_v30 = vsel %vm152_vm9, %v139_v29, 0.0  ;;  %v181_v58 = vmul.f32 %v164_v52, %v139_v29 }
  0x79   :  { %171 = vadd.xlane.f32.xlu0 %v170_v30 }
  0xe4   :  { %v155_v31 = vpop.xlane.xlu0 %154  ;;  %v188_v32 = vpop.xlane.xlu1 %187 }
  0xe5   :  { %v156_v33 = vrot.slane %v155_v31, 4  ;;  %v189_v34 = vrot.slane %v188_v32, 4 }
  0xe7   :  { %v157_v35 = vadd.f32 %v156_v33, %v155_v31  ;;  %v190_v36 = vadd.f32 %v189_v34, %v188_v32 }
  0xe9   :  { %v158_v37 = vrot.slane %v157_v35, 2  ;;  %v191_v39 = vrot.slane %v190_v36, 2 }
  0xeb   :  { %v159_v38 = vadd.f32 %v158_v37, %v157_v35  ;;  %v192_v45 = vadd.f32 %v191_v39, %v190_v36 }
  0xec   :  { %v172_v40 = vpop.xlane.xlu0 %171 }
  0xed   :  { %v173_v41 = vrot.slane %v172_v40, 4  ;;  %v160_v42 = vrot.slane %v159_v38, 1  ;;  %v193_v48 = vrot.slane %v192_v45, 1 }
  0xef   :  { %v174_v43 = vadd.f32 %v173_v41, %v172_v40  ;;  %v161_v44 = vadd.f32 %v160_v42, %v159_v38  ;;  %v194_v51 = vadd.f32 %v193_v48, %v192_v45 }
  0xf1   :  { %v175_v46 = vrot.slane %v174_v43, 2  ;;  %434 = vpush %v161_v44 }
  0xf3   :  { %v176_v47 = vadd.f32 %v175_v46, %v174_v43 }
  0xf5   :  { %v177_v49 = vrot.slane %v176_v47, 1 }
  0xf7   :  { %v178_v50 = vadd.f32 %v177_v49, %v176_v47 }
  0xf9   :  { %436 = vpush %v178_v50 }
  0xfa   :  { %438 = vpush %v194_v51 }
 0x122   :  { %s435_s6 = spop %434 }
 0x123   :  { %s163_s7 = smul.f32 %s435_s6, %s151_s5 }
 0x125   :  { %v166_v54 = vstv %s163_s7 }
 0x126   :  { %v167_v55 = vadd.f32 %v166_v54, %v165_v53 }
 0x128   :  { %v168_v56 = vmax.f32 %v167_v55, 0.0 }
 0x12a   :  { %v169_v57 = vmin.f32 %v168_v56, 1.0  ;;  %s437_s8 = spop %436 }
 0x12b   :  { %s180_s9 = smul.f32 %s437_s8, %s151_s5  ;;  %s439_s10 = spop %438 }
 0x12c   :  { %202 = vst [vmem:[%s584_s2] sm:$0x3] %v169_v57  ;;  %s196_s13 = smul.f32 %s439_s10, %s151_s5 }
 0x12d   :  { %v182_v60 = vstv %s180_s9 }
 0x12e   :  { %v183_v61 = vadd.f32 %v182_v60, %v181_v58  ;;  %v198_v62 = vstv %s196_s13 }
 0x12f   :  { %v199_v63 = vadd.f32 %v198_v62, %v197_v59 }
 0x130   :  { %v184_v0 = vmax.f32 %v183_v61, 0.0 }
 0x131   :  { %v200_v1 = vmax.f32 %v199_v63, 0.0 }
 0x132   :  { %v185_v2 = vmin.f32 %v184_v0, 1.0 }
 0x133   :  { %v201_v3 = vmin.f32 %v200_v1, 1.0 }
 0x134   :  { %411 = vst [vmem:[%s584_s2 + $0x2] sm:$0x3] %v185_v2 }
 0x135   :  { %412 = vst [vmem:[%s584_s2 + $0x4] sm:$0x3] %v201_v3 }
 0x136 PF:  { %s413_s18 = sld [smem:[#allocation2 + $0x8]] }
 0x137   :  { %s537_s19 = sld [smem:[#allocation2 + $0x9]] }
 0x138   :  { %s539_s0 = sld [smem:[#allocation2 + $0xa]] }
 0x139   :  { %s541_s20 = sld [smem:[#allocation2 + $0xb]] }
 0x13a   :  { %s543_s21 = sld [smem:[#allocation2 + $0xc]] }
 0x13c   :  { %p219_p2 = scmp.eq.f32.partialorder %s413_s18, 0.0 }
 0x13d   :  { %v418_v4 = vld [vmem:[%s583_s1 + $0x6] sm:$0xf] (%p219_p2)   ;;  %v420_v5 = vld [vmem:[%s583_s1 + $0xa] sm:$0x3] (%p219_p2) }
 0x13e   :  { %222 = sbr.rel (!%p219_p2) target bundleno = 323 (0x143), region = 25  ;;  %421 = vst [vmem:[%s584_s2 + $0x6] sm:$0xf] (%p219_p2), %v418_v4  }
 0x13f   :  { %423 = vst [vmem:[%s584_s2 + $0xa] sm:$0x3] (%p219_p2), %v420_v5 }
 0x143 PF:  { %p231_p3 = scmp.ne.f32.partialorder %s413_s18, 0.0 }
 0x144   :  { %v424_v6 = vld [vmem:[%s583_s1 + $0x6] sm:$0x3] (%p231_p3)  ;;  %v425_v7 = vld [vmem:[%s583_s1 + $0x8] sm:$0x3] (%p231_p3)  ;;  %v426_v8 = vld [vmem:[%s583_s1 + $0xa] sm:$0x3] (%p231_p3)  ;;  %v302_v56 = vstv (%p231_p3), %s543_s21 }
 0x145   :  { %234 = sbr.rel (!%p231_p3) target bundleno = 614 (0x266), region = 29  ;;  %v243_v9 = vmin.f32 (%p231_p3), %v424_v6, %v425_v7  ;;  %v246_v10 = vsub.f32 (%p231_p3), %v425_v7, %v426_v8  ;;  %v248_v11 = vmul.f32 (%p231_p3), 2.0, %v424_v6  ;;  %v241_v34 = vmax.f32 (%p231_p3), %v424_v6, %v425_v7  ;;  %s338_s8 = ssub.f32 (%p231_p3), 1.0, %s537_s19 }
 0x146   :  { %s293_s1 = smul.f32 (%p231_p3), 0.7083333, %s539_s0  ;;  %v298_v59 = vstv (%p231_p3), %s541_s20  ;;  %vm340_vm3 = vcmask (%p231_p3), 1041408  }
 0x147   :  { %v244_v12 = vmin.f32 (%p231_p3), %v243_v9, %v426_v8  ;;  %v247_v13 = vmul.f32 (%p231_p3), 1.7320508, %v246_v10  ;;  %v249_v14 = vsub.f32 (%p231_p3), %v248_v11, %v425_v7  ;;  %v242_v37 = vmax.f32 (%p231_p3), %v241_v34, %v426_v8  ;;  %s339_s9 = smul.f32 (%p231_p3), 0.00390625, %s338_s8 }
 0x148   :  { %v294_v52 = vstv (%p231_p3), %s293_s1 }
 0x149   :  { %v250_v15 = vsub.f32 (%p231_p3), %v249_v14, %v426_v8  ;;  %v252_v16 = vand.u32 (%p231_p3), 2147483647, %v247_v13  ;;  %vm288_vm12 = vcmp.gt.f32.partialorder (%p231_p3), %v242_v37, 0.0  ;;  %vm282_vm15 = vcmp.lt.f32.partialorder (%p231_p3), %v247_v13, 0.0 }
 0x14a   :  { %v289_v42 = vsel %vm288_vm12, %v242_v37, 1.0  ;;  %v245_v48 = vsub.f32 %v242_v37, %v244_v12  ;;  %v303_v61 = vmul.f32 %v302_v56, %v242_v37  ;;  %v352_v56 = vstv %s537_s19 }
 0x14b   :  { %v251_v17 = vand.u32 2147483647, %v250_v15  ;;  %vm279_vm14 = vcmp.lt.f32.partialorder %v250_v15, 0.0 }
 0x14c   :  { %v304_v0 = vmax.f32 %v303_v61, 0.0 }
 0x14d   :  { %v253_v18 = vmax.f32 %v251_v17, %v252_v16  ;;  %v254_v20 = vmin.f32 %v251_v17, %v252_v16  ;;  %vm276_vm13 = vcmp.gt.f32.partialorder %v252_v16, %v251_v17 }
 0x14e   :  { %v305_v8 = vmin.f32 %v304_v0, 1.0 }
 0x14f   :  { %vm255_vm10 = vcmp.gt.f32.partialorder %v253_v18, 0.0 }
 0x150   :  { %v256_v19 = vsel %vm255_vm10, %v253_v18, 1.0 }
 0x151   :  { %453 = vrcp.f32 %v256_v19 }
 0x157   :  { %v454_v21 = vpop.eup %453 }
 0x158   :  { %v258_v22 = vmul.f32 %v454_v21, %v254_v20 }
 0x15a   :  { %v259_v23 = vsel %vm255_vm10, %v258_v22, 0.0 }
 0x15b   :  { %v262_v24 = vadd.f32 1.0, %v259_v23  ;;  %v427_v25 = vadd.f32 -1.0, %v259_v23  ;;  %vm260_vm11 = vcmp.gt.f32.partialorder %v259_v23, 0.41421357 }
 0x15d   :  { %455 = vrcp.f32 %v262_v24 }
 0x15e   :  { %457 = vrcp.f32 %v289_v42 }
 0x163   :  { %v456_v26 = vpop.eup %455 }
 0x164   :  { %v264_v27 = vmul.f32 %v456_v26, %v427_v25  ;;  %v458_v50 = vpop.eup %457 }
 0x165   :  { %v291_v54 = vmul.f32 %v458_v50, %v245_v48 }
 0x166   :  { %v265_v28 = vsel %vm260_vm11, %v264_v27, %v259_v23 }
 0x167   :  { %v266_v29 = vmul.f32 %v265_v28, %v265_v28  ;;  %v292_v57 = vsel %vm288_vm12, %v291_v54, 0.0 }
 0x168   :  { %v299_v62 = vmul.f32 %v298_v59, %v292_v57 }
 0x169   :  { %v267_v30 = vmul.f32 -0.14285715, %v266_v29  ;;  %v271_v33 = vmul.f32 %v266_v29, %v265_v28 }
 0x16a   :  { %v300_v4 = vmax.f32 %v299_v62, 0.0 }
 0x16b   :  { %v268_v31 = vadd.f32 0.2, %v267_v30 }
 0x16c   :  { %v301_v11 = vmin.f32 %v300_v4, 1.0 }
 0x16d   :  { %v269_v32 = vmul.f32 %v268_v31, %v266_v29 }
 0x16e   :  { %v306_v19 = vmul.f32 %v305_v8, %v301_v11 }
 0x16f   :  { %v270_v35 = vadd.f32 -0.33333334, %v269_v32 }
 0x171   :  { %v272_v36 = vmul.f32 %v271_v33, %v270_v35 }
 0x173   :  { %v273_v38 = vadd.f32 %v272_v36, %v265_v28 }
 0x175   :  { %v274_v39 = vadd.f32 0.7853982, %v273_v38 }
 0x177   :  { %v275_v40 = vsel %vm260_vm11, %v274_v39, %v273_v38 }
 0x178   :  { %v277_v41 = vsub.f32 1.5707964, %v275_v40 }
 0x17a   :  { %v278_v43 = vsel %vm276_vm13, %v277_v41, %v275_v40 }
 0x17b   :  { %v280_v44 = vsub.f32 3.1415927, %v278_v43 }
 0x17d   :  { %v281_v45 = vsel %vm279_vm14, %v280_v44, %v278_v43 }
 0x17e   :  { %v283_v46 = vsub.f32 0.0, %v281_v45 }
 0x180   :  { %v284_v47 = vsel %vm282_vm15, %v283_v46, %v281_v45 }
 0x181   :  { %v285_v49 = vmul.f32 0.15915494, %v284_v47 }
 0x183   :  { %v286_v51 = vfloor.f32 %v285_v49 }
 0x185   :  { %v287_v53 = vsub.f32 %v285_v49, %v286_v51 }
 0x187   :  { %v295_v55 = vadd.f32 %v294_v52, %v287_v53 }
 0x189   :  { %v296_v58 = vfloor.f32 %v295_v55 }
 0x18b   :  { %v297_v60 = vsub.f32 %v295_v55, %v296_v58 }
 0x18d   :  { %v307_v63 = vmul.f32 6.0, %v297_v60 }
 0x18f   :  { %v308_v1 = vadd.f32 5.0, %v307_v63  ;;  %v328_v2 = vadd.f32 1.0, %v307_v63  ;;  %v318_v3 = vadd.f32 3.0, %v307_v63 }
 0x191   :  { %vm309_vm0 = vcmp.ge.f32.partialorder %v308_v1, 6.0  ;;  %v428_v5 = vadd.f32 -6.0, %v308_v1  ;;  %vm329_vm1 = vcmp.ge.f32.partialorder %v328_v2, 6.0  ;;  %v430_v6 = vadd.f32 -6.0, %v328_v2 }
 0x192   :  { %vm319_vm2 = vcmp.ge.f32.partialorder %v318_v3, 6.0  ;;  %v429_v7 = vadd.f32 -6.0, %v318_v3 }
 0x193   :  { %v311_v9 = vsel %vm309_vm0, %v428_v5, %v308_v1  ;;  %v331_v10 = vsel %vm329_vm1, %v430_v6, %v328_v2 }
 0x194   :  { %v312_v12 = vsub.f32 4.0, %v311_v9  ;;  %v332_v13 = vsub.f32 4.0, %v331_v10  ;;  %v321_v14 = vsel %vm319_vm2, %v429_v7, %v318_v3 }
 0x195   :  { %v322_v15 = vsub.f32 4.0, %v321_v14 }
 0x196   :  { %v313_v16 = vmin.f32 %v311_v9, %v312_v12  ;;  %v333_v17 = vmin.f32 %v331_v10, %v332_v13 }
 0x197   :  { %v323_v18 = vmin.f32 %v321_v14, %v322_v15 }
 0x198   :  { %v314_v20 = vmax.f32 %v313_v16, 0.0  ;;  %v334_v21 = vmax.f32 %v333_v17, 0.0 }
 0x199   :  { %v324_v22 = vmax.f32 %v323_v18, 0.0 }
 0x19a   :  { %v315_v23 = vmin.f32 %v314_v20, 1.0  ;;  %v335_v24 = vmin.f32 %v334_v21, 1.0 }
 0x19b   :  { %v325_v25 = vmin.f32 %v324_v22, 1.0 }
 0x19c   :  { %v316_v26 = vmul.f32 %v315_v23, %v306_v19  ;;  %v336_v27 = vmul.f32 %v335_v24, %v306_v19 }
 0x19d   :  { %v326_v30 = vmul.f32 %v325_v25, %v306_v19 }
 0x19e   :  { %v317_v28 = vsub.f32 %v305_v8, %v316_v26  ;;  %v337_v29 = vsub.f32 %v305_v8, %v336_v27 }
 0x19f   :  { %v327_v33 = vsub.f32 %v305_v8, %v326_v30 }
 0x1a0   :  { %v341_v31 = vsel %vm340_vm3, %v317_v28, 0.0  ;;  %v374_v32 = vsel %vm340_vm3, %v337_v29, 0.0  ;;  %v353_v57 = vmul.f32 %v352_v56, %v317_v28  ;;  %v385_v63 = vmul.f32 %v352_v56, %v337_v29 }
 0x1a1   :  { %342 = vadd.xlane.f32.xlu0 %v341_v31  ;;  %375 = vadd.xlane.f32.xlu1 %v374_v32  ;;  %v358_v34 = vsel %vm340_vm3, %v327_v33, 0.0  ;;  %v369_v62 = vmul.f32 %v352_v56, %v327_v33 }
 0x1a9   :  { %359 = vadd.xlane.f32.xlu0 %v358_v34 }
 0x214   :  { %v343_v35 = vpop.xlane.xlu0 %342  ;;  %v376_v36 = vpop.xlane.xlu1 %375 }
 0x215   :  { %v344_v37 = vrot.slane %v343_v35, 4  ;;  %v377_v38 = vrot.slane %v376_v36, 4 }
 0x217   :  { %v345_v39 = vadd.f32 %v344_v37, %v343_v35  ;;  %v378_v40 = vadd.f32 %v377_v38, %v376_v36 }
 0x219   :  { %v346_v41 = vrot.slane %v345_v39, 2  ;;  %v379_v43 = vrot.slane %v378_v40, 2 }
 0x21b   :  { %v347_v42 = vadd.f32 %v346_v41, %v345_v39  ;;  %v380_v49 = vadd.f32 %v379_v43, %v378_v40 }
 0x21c   :  { %v360_v44 = vpop.xlane.xlu0 %359 }
 0x21d   :  { %v361_v45 = vrot.slane %v360_v44, 4  ;;  %v348_v46 = vrot.slane %v347_v42, 1  ;;  %v381_v52 = vrot.slane %v380_v49, 1 }
 0x21f   :  { %v362_v47 = vadd.f32 %v361_v45, %v360_v44  ;;  %v349_v48 = vadd.f32 %v348_v46, %v347_v42  ;;  %v382_v55 = vadd.f32 %v381_v52, %v380_v49 }
 0x221   :  { %v363_v50 = vrot.slane %v362_v47, 2  ;;  %440 = vpush %v349_v48 }
 0x223   :  { %v364_v51 = vadd.f32 %v363_v50, %v362_v47 }
 0x225   :  { %v365_v53 = vrot.slane %v364_v51, 1 }
 0x227   :  { %v366_v54 = vadd.f32 %v365_v53, %v364_v51 }
 0x229   :  { %442 = vpush %v366_v54 }
 0x22a   :  { %444 = vpush %v382_v55 }
 0x252   :  { %s441_s10 = spop %440 }
 0x253   :  { %s351_s11 = smul.f32 %s441_s10, %s339_s9 }
 0x255   :  { %v354_v58 = vstv %s351_s11 }
 0x256   :  { %v355_v59 = vadd.f32 %v354_v58, %v353_v57 }
 0x258   :  { %v356_v60 = vmax.f32 %v355_v59, 0.0 }
 0x25a   :  { %v357_v61 = vmin.f32 %v356_v60, 1.0  ;;  %s443_s12 = spop %442 }
 0x25b   :  { %s368_s13 = smul.f32 %s443_s12, %s339_s9  ;;  %s445_s14 = spop %444 }
 0x25c   :  { %431 = vst [vmem:[%s584_s2 + $0x6] sm:$0x3] %v357_v61  ;;  %s384_s17 = smul.f32 %s445_s14, %s339_s9 }
 0x25d   :  { %v370_v0 = vstv %s368_s13 }
 0x25e   :  { %v371_v1 = vadd.f32 %v370_v0, %v369_v62  ;;  %v386_v2 = vstv %s384_s17 }
 0x25f   :  { %v387_v3 = vadd.f32 %v386_v2, %v385_v63 }
 0x260   :  { %v372_v4 = vmax.f32 %v371_v1, 0.0 }
 0x261   :  { %v388_v5 = vmax.f32 %v387_v3, 0.0 }
 0x262   :  { %v373_v6 = vmin.f32 %v372_v4, 1.0 }
 0x263   :  { %v389_v7 = vmin.f32 %v388_v5, 1.0 }
 0x264   :  { %432 = vst [vmem:[%s584_s2 + $0x8] sm:$0x3] %v373_v6 }
 0x265   :  { %433 = vst [vmem:[%s584_s2 + $0xa] sm:$0x3] %v389_v7 }
 0x266 PF:  { %400 = vsyncpa [#allocation3], 1 }

// kernel: branch_1_fun.1
= control target key start
LH: loop header
LB: loop body
LE: loop exit
PB: predicated region body
PF: predicated region fallthrough
CT: control target
= control target key end

     0   :  { %7 = vsyncpa [#allocation3], 0  ;;  %s473_s12 = smov [#allocation2]   ;;  %s592_s0 = inlined_call_operand.vmem [shape: f32[16], index: 0, kind: input, shape index: {}]   ;;  %s593_s1 = inlined_call_operand.vmem [shape: f32[2,3,2,128], index: 1, kind: input, shape index: {}]   ;;  %s594_s2 = inlined_call_operand.vmem [shape: f32[2,3,2,128], index: 2, kind: output, shape index: {}]  }
   0x1   :  { %s13_s11 = sshll.u32 %s592_s0, 4  ;;  %s14_s11 = int_to_ptr.vmem [resolvable:$true] %s13_s11 }
   0x2   :  { %16 = dma.vmem_to_smem %s14_s11, 16, %s473_s12, [#allocation3]  }
   0x3   :  { %471 = dma.done.wait [#allocation3], 16  }
   0x4   :  { %472 = vsyncadd [#allocation3], 4294967280 }
   0x5   :  { %23 = sfence }
   0x6   :  { %s25_s13 = sld [smem:[#allocation2]] }
   0x7   :  { %s492_s14 = sld [smem:[#allocation2 + $0x1]] }
   0x8   :  { %s494_s15 = sld [smem:[#allocation2 + $0x2]] }
   0x9   :  { %s496_s16 = sld [smem:[#allocation2 + $0x3]] }
   0xa   :  { %s498_s17 = sld [smem:[#allocation2 + $0x4]] }
   0xc   :  { %p34_p0 = scmp.eq.f32.partialorder %s25_s13, 0.0 }
   0xd   :  { %v38_v0 = vld [vmem:[%s593_s1] sm:$0xf] (%p34_p0)   ;;  %v40_v1 = vld [vmem:[%s593_s1 + $0x4] sm:$0x3] (%p34_p0) }
   0xe   :  { %37 = sbr.rel (!%p34_p0) target bundleno = 19 (0x13), region = 17  ;;  %41 = vst [vmem:[%s594_s2] sm:$0xf] (%p34_p0), %v38_v0  }
   0xf   :  { %43 = vst [vmem:[%s594_s2 + $0x4] sm:$0x3] (%p34_p0), %v40_v1 }
  0x13 PF:  { %p44_p1 = scmp.ne.f32.partialorder %s25_s13, 0.0 }
  0x14   :  { %v48_v2 = vld [vmem:[%s593_s1] sm:$0x3] (%p44_p1)  ;;  %vm55_vm0 = vcmask (%p44_p1), 1041408   ;;  %v406_v3 = vld [vmem:[%s593_s1 + $0x4] sm:$0x3] (%p44_p1)  ;;  %s53_s3 = ssub.f32 (%p44_p1), 1.0, %s492_s14  ;;  %v67_v29 = vstv (%p44_p1), %s492_s14  ;;  %v166_v60 = vstv (%p44_p1), %s498_s17 }
  0x15   :  { %47 = sbr.rel (!%p44_p1) target bundleno = 310 (0x136), region = 21  ;;  %v56_v4 = vsel (%p44_p1), %vm55_vm0, %v48_v2, 0.0  ;;  %v89_v5 = vsel (%p44_p1), %vm55_vm0, %v406_v3, 0.0  ;;  %v405_v6 = vld [vmem:[%s593_s1 + $0x2] sm:$0x3] (%p44_p1)  ;;  %v68_v30 = vmul.f32 (%p44_p1), %v67_v29, %v48_v2  ;;  %v100_v35 = vmul.f32 (%p44_p1), %v406_v3, %v67_v29 }
  0x16   :  { %57 = vadd.xlane.f32.xlu0 (%p44_p1), %v56_v4  ;;  %90 = vadd.xlane.f32.xlu1 (%p44_p1), %v89_v5  ;;  %v73_v7 = vsel (%p44_p1), %vm55_vm0, %v405_v6, 0.0  ;;  %s54_s4 = smul.f32 (%p44_p1), 0.00390625, %s53_s3  ;;  %v84_v33 = vmul.f32 (%p44_p1), %v405_v6, %v67_v29  ;;  %v162_v1 = vstv (%p44_p1), %s496_s16 }
  0x17   :  { %s157_s11 = smul.f32 (%p44_p1), 0.7083333, %s494_s15 }
  0x1e   :  { %74 = vadd.xlane.f32.xlu0 %v73_v7 }
  0x89   :  { %v58_v8 = vpop.xlane.xlu0 %57  ;;  %v91_v9 = vpop.xlane.xlu1 %90 }
  0x8a   :  { %v59_v10 = vrot.slane %v58_v8, 4  ;;  %v92_v11 = vrot.slane %v91_v9, 4 }
  0x8c   :  { %v60_v12 = vadd.f32 %v59_v10, %v58_v8  ;;  %v93_v13 = vadd.f32 %v92_v11, %v91_v9 }
  0x8e   :  { %v61_v14 = vrot.slane %v60_v12, 2  ;;  %v94_v16 = vrot.slane %v93_v13, 2 }
  0x90   :  { %v62_v15 = vadd.f32 %v61_v14, %v60_v12  ;;  %v95_v22 = vadd.f32 %v94_v16, %v93_v13 }
  0x91   :  { %v75_v17 = vpop.xlane.xlu0 %74 }
  0x92   :  { %v76_v18 = vrot.slane %v75_v17, 4  ;;  %v63_v19 = vrot.slane %v62_v15, 1  ;;  %v96_v25 = vrot.slane %v95_v22, 1 }
  0x94   :  { %v77_v20 = vadd.f32 %v76_v18, %v75_v17  ;;  %v64_v21 = vadd.f32 %v63_v19, %v62_v15  ;;  %v97_v28 = vadd.f32 %v96_v25, %v95_v22 }
  0x96   :  { %v78_v23 = vrot.slane %v77_v20, 2  ;;  %434 = vpush %v64_v21 }
  0x98   :  { %v79_v24 = vadd.f32 %v78_v23, %v77_v20 }
  0x9a   :  { %v80_v26 = vrot.slane %v79_v24, 1 }
  0x9c   :  { %v81_v27 = vadd.f32 %v80_v26, %v79_v24 }
  0x9e   :  { %436 = vpush %v81_v27 }
  0x9f   :  { %438 = vpush %v97_v28 }
  0xc7   :  { %s435_s5 = spop %434 }
  0xc8   :  { %s66_s6 = smul.f32 %s435_s5, %s54_s4 }
  0xca   :  { %v69_v31 = vstv %s66_s6 }
  0xcb   :  { %v70_v32 = vadd.f32 %v69_v31, %v68_v30 }
  0xcd   :  { %v71_v34 = vmax.f32 %v70_v32, 0.0 }
  0xcf   :  { %s437_s7 = spop %436  ;;  %v72_v37 = vmin.f32 %v71_v34, 1.0 }
  0xd0   :  { %s83_s8 = smul.f32 %s437_s7, %s54_s4  ;;  %s439_s9 = spop %438 }
  0xd1   :  { %s99_s10 = smul.f32 %s439_s9, %s54_s4  ;;  %v112_v43 = vmul.f32 2.0, %v72_v37 }
  0xd2   :  { %v85_v36 = vstv %s83_s8 }
  0xd3   :  { %v86_v38 = vadd.f32 %v85_v36, %v84_v33  ;;  %v101_v39 = vstv %s99_s10 }
  0xd4   :  { %v102_v40 = vadd.f32 %v101_v39, %v100_v35  ;;  %v158_v35 = vstv %s157_s11 }
  0xd5   :  { %v87_v41 = vmax.f32 %v86_v38, 0.0 }
  0xd6   :  { %v103_v42 = vmax.f32 %v102_v40, 0.0 }
  0xd7   :  { %v88_v44 = vmin.f32 %v87_v41, 1.0 }
  0xd8   :  { %v104_v45 = vmin.f32 %v103_v42, 1.0 }
  0xd9   :  { %v105_v46 = vmax.f32 %v72_v37, %v88_v44  ;;  %v107_v47 = vmin.f32 %v72_v37, %v88_v44  ;;  %v113_v48 = vsub.f32 %v112_v43, %v88_v44 }
  0xda   :  { %v110_v49 = vsub.f32 %v88_v44, %v104_v45 }
  0xdb   :  { %v106_v50 = vmax.f32 %v105_v46, %v104_v45  ;;  %v108_v51 = vmin.f32 %v107_v47, %v104_v45  ;;  %v114_v52 = vsub.f32 %v113_v48, %v104_v45 }
  0xdc   :  { %v111_v53 = vmul.f32 1.7320508, %v110_v49 }
  0xdd   :  { %v109_v54 = vsub.f32 %v106_v50, %v108_v51  ;;  %v115_v55 = vand.u32 2147483647, %v114_v52  ;;  %vm152_vm1 = vcmp.gt.f32.partialorder %v106_v50, 0.0  ;;  %v167_v63 = vmul.f32 %v166_v60, %v106_v50 }
  0xde   :  { %v116_v56 = vand.u32 2147483647, %v111_v53  ;;  %v153_v57 = vsel %vm152_vm1, %v106_v50, 1.0  ;;  %vm143_vm5 = vcmp.lt.f32.partialorder %v114_v52, 0.0  ;;  %vm146_vm6 = vcmp.lt.f32.partialorder %v111_v53, 0.0 }
  0xdf   :  { %447 = vrcp.f32 %v153_v57  ;;  %v168_v4 = vmax.f32 %v167_v63, 0.0 }
  0xe0   :  { %v117_v58 = vmax.f32 %v115_v55, %v116_v56  ;;  %v118_v59 = vmin.f32 %v115_v55, %v116_v56  ;;  %vm140_vm2 = vcmp.gt.f32.partialorder %v116_v56, %v115_v55 }
  0xe1   :  { %v525_v10 = vmin.f32 %v168_v4, 1.0 }
  0xe2   :  { %vm119_vm3 = vcmp.gt.f32.partialorder %v117_v58, 0.0 }
  0xe3   :  { %v120_v61 = vsel %vm119_vm3, %v117_v58, 1.0 }
  0xe4   :  { %449 = vrcp.f32 %v120_v61 }
  0xe5   :  { %v448_v62 = vpop.eup %447 }
  0xe6   :  { %v155_v0 = vmul.f32 %v448_v62, %v109_v54 }
  0xe8   :  { %v156_v2 = vsel %vm152_vm1, %v155_v0, 0.0 }
  0xe9   :  { %v163_v3 = vmul.f32 %v162_v1, %v156_v2 }
  0xea   :  { %v450_v5 = vpop.eup %449 }
  0xeb   :  { %v122_v6 = vmul.f32 %v450_v5, %v118_v59  ;;  %v164_v7 = vmax.f32 %v163_v3, 0.0 }
  0xed   :  { %v123_v8 = vsel %vm119_vm3, %v122_v6, 0.0  ;;  %v165_v9 = vmin.f32 %v164_v7, 1.0 }
  0xee   :  { %v126_v11 = vadd.f32 1.0, %v123_v8  ;;  %v407_v13 = vadd.f32 -1.0, %v123_v8  ;;  %vm124_vm4 = vcmp.gt.f32.partialorder %v123_v8, 0.41421357 }
  0xef   :  { %v170_v12 = vmul.f32 %v525_v10, %v165_v9 }
  0xf0   :  { %451 = vrcp.f32 %v126_v11 }
  0xf6   :  { %v452_v14 = vpop.eup %451 }
  0xf7   :  { %v128_v15 = vmul.f32 %v452_v14, %v407_v13 }
  0xf9   :  { %v129_v16 = vsel %vm124_vm4, %v128_v15, %v123_v8 }
  0xfa   :  { %v130_v17 = vmul.f32 %v129_v16, %v129_v16 }
  0xfc   :  { %v131_v18 = vmul.f32 -0.14285715, %v130_v17  ;;  %v135_v22 = vmul.f32 %v130_v17, %v129_v16 }
  0xfe   :  { %v132_v19 = vadd.f32 0.2, %v131_v18 }
 0x100   :  { %v133_v20 = vmul.f32 %v132_v19, %v130_v17 }
 0x102   :  { %v134_v21 = vadd.f32 -0.33333334, %v133_v20 }
 0x104   :  { %v136_v23 = vmul.f32 %v135_v22, %v134_v21 }
 0x106   :  { %v137_v24 = vadd.f32 %v136_v23, %v129_v16 }
 0x108   :  { %v138_v25 = vadd.f32 0.7853982, %v137_v24 }
 0x10a   :  { %v139_v26 = vsel %vm124_vm4, %v138_v25, %v137_v24 }
 0x10b   :  { %v141_v27 = vsub.f32 1.5707964, %v139_v26 }
 0x10d   :  { %v142_v28 = vsel %vm140_vm2, %v141_v27, %v139_v26 }
 0x10e   :  { %v144_v29 = vsub.f32 3.1415927, %v142_v28 }
 0x110   :  { %v145_v30 = vsel %vm143_vm5, %v144_v29, %v142_v28 }
 0x111   :  { %v147_v31 = vsub.f32 0.0, %v145_v30 }
 0x113   :  { %v148_v32 = vsel %vm146_vm6, %v147_v31, %v145_v30 }
 0x114   :  { %v149_v33 = vmul.f32 0.15915494, %v148_v32 }
 0x116   :  { %v150_v34 = vfloor.f32 %v149_v33 }
 0x118   :  { %v151_v36 = vsub.f32 %v149_v33, %v150_v34 }
 0x11a   :  { %v159_v37 = vadd.f32 %v158_v35, %v151_v36 }
 0x11c   :  { %v160_v38 = vfloor.f32 %v159_v37 }
 0x11e   :  { %v161_v39 = vsub.f32 %v159_v37, %v160_v38 }
 0x120   :  { %v171_v40 = vmul.f32 6.0, %v161_v39 }
 0x122   :  { %v172_v41 = vadd.f32 5.0, %v171_v40  ;;  %v182_v42 = vadd.f32 3.0, %v171_v40  ;;  %v192_v43 = vadd.f32 1.0, %v171_v40 }
 0x124   :  { %vm173_vm7 = vcmp.ge.f32.partialorder %v172_v41, 6.0  ;;  %v408_v44 = vadd.f32 -6.0, %v172_v41  ;;  %vm183_vm8 = vcmp.ge.f32.partialorder %v182_v42, 6.0  ;;  %v409_v45 = vadd.f32 -6.0, %v182_v42 }
 0x125   :  { %vm193_vm9 = vcmp.ge.f32.partialorder %v192_v43, 6.0  ;;  %v410_v46 = vadd.f32 -6.0, %v192_v43 }
 0x126   :  { %v175_v47 = vsel %vm173_vm7, %v408_v44, %v172_v41  ;;  %v185_v48 = vsel %vm183_vm8, %v409_v45, %v182_v42 }
 0x127   :  { %v176_v49 = vsub.f32 4.0, %v175_v47  ;;  %v186_v50 = vsub.f32 4.0, %v185_v48  ;;  %v195_v51 = vsel %vm193_vm9, %v410_v46, %v192_v43 }
 0x128   :  { %v196_v52 = vsub.f32 4.0, %v195_v51 }
 0x129   :  { %v177_v53 = vmin.f32 %v175_v47, %v176_v49  ;;  %v187_v54 = vmin.f32 %v185_v48, %v186_v50 }
 0x12a   :  { %v197_v55 = vmin.f32 %v195_v51, %v196_v52 }
 0x12b   :  { %v178_v56 = vmax.f32 %v177_v53, 0.0  ;;  %v188_v57 = vmax.f32 %v187_v54, 0.0 }
 0x12c   :  { %v198_v58 = vmax.f32 %v197_v55, 0.0 }
 0x12d   :  { %v179_v59 = vmin.f32 %v178_v56, 1.0  ;;  %v189_v60 = vmin.f32 %v188_v57, 1.0 }
 0x12e   :  { %v199_v61 = vmin.f32 %v198_v58, 1.0 }
 0x12f   :  { %v180_v62 = vmul.f32 %v179_v59, %v170_v12  ;;  %v190_v63 = vmul.f32 %v189_v60, %v170_v12 }
 0x130   :  { %v200_v0 = vmul.f32 %v199_v61, %v170_v12 }
 0x131   :  { %v181_v1 = vsub.f32 %v525_v10, %v180_v62  ;;  %v191_v2 = vsub.f32 %v525_v10, %v190_v63 }
 0x132   :  { %v201_v3 = vsub.f32 %v525_v10, %v200_v0 }
 0x133   :  { %202 = vst [vmem:[%s594_s2] sm:$0x3] %v181_v1 }
 0x134   :  { %411 = vst [vmem:[%s594_s2 + $0x2] sm:$0x3] %v191_v2 }
 0x135   :  { %412 = vst [vmem:[%s594_s2 + $0x4] sm:$0x3] %v201_v3 }
 0x136 PF:  { %s413_s18 = sld [smem:[#allocation2 + $0x8]] }
 0x137   :  { %s542_s19 = sld [smem:[#allocation2 + $0x9]] }
 0x138   :  { %s544_s0 = sld [smem:[#allocation2 + $0xa]] }
 0x139   :  { %s546_s20 = sld [smem:[#allocation2 + $0xb]] }
 0x13a   :  { %s548_s21 = sld [smem:[#allocation2 + $0xc]] }
 0x13c   :  { %p219_p2 = scmp.eq.f32.partialorder %s413_s18, 0.0 }
 0x13d   :  { %v418_v4 = vld [vmem:[%s593_s1 + $0x6] sm:$0xf] (%p219_p2)   ;;  %v420_v5 = vld [vmem:[%s593_s1 + $0xa] sm:$0x3] (%p219_p2) }
 0x13e   :  { %222 = sbr.rel (!%p219_p2) target bundleno = 323 (0x143), region = 25  ;;  %421 = vst [vmem:[%s594_s2 + $0x6] sm:$0xf] (%p219_p2), %v418_v4  }
 0x13f   :  { %423 = vst [vmem:[%s594_s2 + $0xa] sm:$0x3] (%p219_p2), %v420_v5 }
 0x143 PF:  { %p231_p3 = scmp.ne.f32.partialorder %s413_s18, 0.0 }
 0x144   :  { %v424_v6 = vld [vmem:[%s593_s1 + $0x6] sm:$0x3] (%p231_p3)  ;;  %vm243_vm10 = vcmask (%p231_p3), 1041408   ;;  %v426_v7 = vld [vmem:[%s593_s1 + $0xa] sm:$0x3] (%p231_p3)  ;;  %v255_v33 = vstv (%p231_p3), %s542_s19  ;;  %v354_v0 = vstv (%p231_p3), %s548_s21 }
 0x145   :  { %234 = sbr.rel (!%p231_p3) target bundleno = 614 (0x266), region = 29  ;;  %v244_v8 = vsel (%p231_p3), %vm243_vm10, %v424_v6, 0.0  ;;  %v277_v9 = vsel (%p231_p3), %vm243_vm10, %v426_v7, 0.0  ;;  %v425_v10 = vld [vmem:[%s593_s1 + $0x8] sm:$0x3] (%p231_p3)  ;;  %s241_s1 = ssub.f32 (%p231_p3), 1.0, %s542_s19  ;;  %v256_v34 = vmul.f32 (%p231_p3), %v424_v6, %v255_v33  ;;  %v288_v39 = vmul.f32 (%p231_p3), %v426_v7, %v255_v33 }
 0x146   :  { %245 = vadd.xlane.f32.xlu0 (%p231_p3), %v244_v8  ;;  %278 = vadd.xlane.f32.xlu1 (%p231_p3), %v277_v9  ;;  %v261_v11 = vsel (%p231_p3), %vm243_vm10, %v425_v10, 0.0  ;;  %v272_v37 = vmul.f32 (%p231_p3), %v425_v10, %v255_v33  ;;  %v350_v5 = vstv (%p231_p3), %s546_s20  ;;  %s345_s15 = smul.f32 (%p231_p3), 0.7083333, %s544_s0 }
 0x147   :  { %s242_s8 = smul.f32 (%p231_p3), 0.00390625, %s241_s1 }
 0x14e   :  { %262 = vadd.xlane.f32.xlu0 %v261_v11 }
 0x1b9   :  { %v246_v12 = vpop.xlane.xlu0 %245  ;;  %v279_v13 = vpop.xlane.xlu1 %278 }
 0x1ba   :  { %v247_v14 = vrot.slane %v246_v12, 4  ;;  %v280_v15 = vrot.slane %v279_v13, 4 }
 0x1bc   :  { %v248_v16 = vadd.f32 %v247_v14, %v246_v12  ;;  %v281_v17 = vadd.f32 %v280_v15, %v279_v13 }
 0x1be   :  { %v249_v18 = vrot.slane %v248_v16, 2  ;;  %v282_v20 = vrot.slane %v281_v17, 2 }
 0x1c0   :  { %v250_v19 = vadd.f32 %v249_v18, %v248_v16  ;;  %v283_v26 = vadd.f32 %v282_v20, %v281_v17 }
 0x1c1   :  { %v263_v21 = vpop.xlane.xlu0 %262 }
 0x1c2   :  { %v264_v22 = vrot.slane %v263_v21, 4  ;;  %v251_v23 = vrot.slane %v250_v19, 1  ;;  %v284_v29 = vrot.slane %v283_v26, 1 }
 0x1c4   :  { %v265_v24 = vadd.f32 %v264_v22, %v263_v21  ;;  %v252_v25 = vadd.f32 %v251_v23, %v250_v19  ;;  %v285_v32 = vadd.f32 %v284_v29, %v283_v26 }
 0x1c6   :  { %v266_v27 = vrot.slane %v265_v24, 2  ;;  %440 = vpush %v252_v25 }
 0x1c8   :  { %v267_v28 = vadd.f32 %v266_v27, %v265_v24 }
 0x1ca   :  { %v268_v30 = vrot.slane %v267_v28, 1 }
 0x1cc   :  { %v269_v31 = vadd.f32 %v268_v30, %v267_v28 }
 0x1ce   :  { %442 = vpush %v269_v31 }
 0x1cf   :  { %444 = vpush %v285_v32 }
 0x1f7   :  { %s441_s9 = spop %440 }
 0x1f8   :  { %s254_s10 = smul.f32 %s441_s9, %s242_s8 }
 0x1fa   :  { %v257_v35 = vstv %s254_s10 }
 0x1fb   :  { %v258_v36 = vadd.f32 %v257_v35, %v256_v34 }
 0x1fd   :  { %v259_v38 = vmax.f32 %v258_v36, 0.0 }
 0x1ff   :  { %s443_s11 = spop %442  ;;  %v260_v41 = vmin.f32 %v259_v38, 1.0 }
 0x200   :  { %s271_s12 = smul.f32 %s443_s11, %s242_s8  ;;  %s445_s13 = spop %444 }
 0x201   :  { %s287_s14 = smul.f32 %s445_s13, %s242_s8  ;;  %v300_v47 = vmul.f32 2.0, %v260_v41 }
 0x202   :  { %v273_v40 = vstv %s271_s12 }
 0x203   :  { %v274_v42 = vadd.f32 %v273_v40, %v272_v37  ;;  %v289_v43 = vstv %s287_s14 }
 0x204   :  { %v290_v44 = vadd.f32 %v289_v43, %v288_v39  ;;  %v346_v39 = vstv %s345_s15 }
 0x205   :  { %v275_v45 = vmax.f32 %v274_v42, 0.0 }
 0x206   :  { %v291_v46 = vmax.f32 %v290_v44, 0.0 }
 0x207   :  { %v276_v48 = vmin.f32 %v275_v45, 1.0 }
 0x208   :  { %v292_v49 = vmin.f32 %v291_v46, 1.0 }
 0x209   :  { %v293_v50 = vmax.f32 %v260_v41, %v276_v48  ;;  %v295_v51 = vmin.f32 %v260_v41, %v276_v48  ;;  %v301_v52 = vsub.f32 %v300_v47, %v276_v48 }
 0x20a   :  { %v298_v53 = vsub.f32 %v276_v48, %v292_v49 }
 0x20b   :  { %v294_v54 = vmax.f32 %v293_v50, %v292_v49  ;;  %v296_v55 = vmin.f32 %v295_v51, %v292_v49  ;;  %v302_v56 = vsub.f32 %v301_v52, %v292_v49 }
 0x20c   :  { %v299_v57 = vmul.f32 1.7320508, %v298_v53 }
 0x20d   :  { %v297_v58 = vsub.f32 %v294_v54, %v296_v55  ;;  %v303_v59 = vand.u32 2147483647, %v302_v56  ;;  %vm340_vm11 = vcmp.gt.f32.partialorder %v294_v54, 0.0  ;;  %v355_v3 = vmul.f32 %v354_v0, %v294_v54 }
 0x20e   :  { %v304_v60 = vand.u32 2147483647, %v299_v57  ;;  %v341_v61 = vsel %vm340_vm11, %v294_v54, 1.0  ;;  %vm331_vm15 = vcmp.lt.f32.partialorder %v302_v56, 0.0  ;;  %vm334_vm0 = vcmp.lt.f32.partialorder %v299_v57, 0.0 }
 0x20f   :  { %453 = vrcp.f32 %v341_v61  ;;  %v356_v8 = vmax.f32 %v355_v3, 0.0 }
 0x210   :  { %v305_v62 = vmax.f32 %v303_v59, %v304_v60  ;;  %v306_v63 = vmin.f32 %v303_v59, %v304_v60  ;;  %vm328_vm12 = vcmp.gt.f32.partialorder %v304_v60, %v303_v59 }
 0x211   :  { %v575_v14 = vmin.f32 %v356_v8, 1.0 }
 0x212   :  { %vm307_vm13 = vcmp.gt.f32.partialorder %v305_v62, 0.0 }
 0x213   :  { %v308_v1 = vsel %vm307_vm13, %v305_v62, 1.0 }
 0x214   :  { %455 = vrcp.f32 %v308_v1 }
 0x215   :  { %v454_v2 = vpop.eup %453 }
 0x216   :  { %v343_v4 = vmul.f32 %v454_v2, %v297_v58 }
 0x218   :  { %v344_v6 = vsel %vm340_vm11, %v343_v4, 0.0 }
 0x219   :  { %v351_v7 = vmul.f32 %v350_v5, %v344_v6 }
 0x21a   :  { %v456_v9 = vpop.eup %455 }
 0x21b   :  { %v310_v10 = vmul.f32 %v456_v9, %v306_v63  ;;  %v352_v11 = vmax.f32 %v351_v7, 0.0 }
 0x21d   :  { %v311_v12 = vsel %vm307_vm13, %v310_v10, 0.0  ;;  %v353_v13 = vmin.f32 %v352_v11, 1.0 }
 0x21e   :  { %v314_v15 = vadd.f32 1.0, %v311_v12  ;;  %v427_v17 = vadd.f32 -1.0, %v311_v12  ;;  %vm312_vm14 = vcmp.gt.f32.partialorder %v311_v12, 0.41421357 }
 0x21f   :  { %v358_v16 = vmul.f32 %v575_v14, %v353_v13 }
 0x220   :  { %457 = vrcp.f32 %v314_v15 }
 0x226   :  { %v458_v18 = vpop.eup %457 }
 0x227   :  { %v316_v19 = vmul.f32 %v458_v18, %v427_v17 }
 0x229   :  { %v317_v20 = vsel %vm312_vm14, %v316_v19, %v311_v12 }
 0x22a   :  { %v318_v21 = vmul.f32 %v317_v20, %v317_v20 }
 0x22c   :  { %v319_v22 = vmul.f32 -0.14285715, %v318_v21  ;;  %v323_v26 = vmul.f32 %v318_v21, %v317_v20 }
 0x22e   :  { %v320_v23 = vadd.f32 0.2, %v319_v22 }
 0x230   :  { %v321_v24 = vmul.f32 %v320_v23, %v318_v21 }
 0x232   :  { %v322_v25 = vadd.f32 -0.33333334, %v321_v24 }
 0x234   :  { %v324_v27 = vmul.f32 %v323_v26, %v322_v25 }
 0x236   :  { %v325_v28 = vadd.f32 %v324_v27, %v317_v20 }
 0x238   :  { %v326_v29 = vadd.f32 0.7853982, %v325_v28 }
 0x23a   :  { %v327_v30 = vsel %vm312_vm14, %v326_v29, %v325_v28 }
 0x23b   :  { %v329_v31 = vsub.f32 1.5707964, %v327_v30 }
 0x23d   :  { %v330_v32 = vsel %vm328_vm12, %v329_v31, %v327_v30 }
 0x23e   :  { %v332_v33 = vsub.f32 3.1415927, %v330_v32 }
 0x240   :  { %v333_v34 = vsel %vm331_vm15, %v332_v33, %v330_v32 }
 0x241   :  { %v335_v35 = vsub.f32 0.0, %v333_v34 }
 0x243   :  { %v336_v36 = vsel %vm334_vm0, %v335_v35, %v333_v34 }
 0x244   :  { %v337_v37 = vmul.f32 0.15915494, %v336_v36 }
 0x246   :  { %v338_v38 = vfloor.f32 %v337_v37 }
 0x248   :  { %v339_v40 = vsub.f32 %v337_v37, %v338_v38 }
 0x24a   :  { %v347_v41 = vadd.f32 %v346_v39, %v339_v40 }
 0x24c   :  { %v348_v42 = vfloor.f32 %v347_v41 }
 0x24e   :  { %v349_v43 = vsub.f32 %v347_v41, %v348_v42 }
 0x250   :  { %v359_v44 = vmul.f32 6.0, %v349_v43 }
 0x252   :  { %v360_v45 = vadd.f32 5.0, %v359_v44  ;;  %v370_v46 = vadd.f32 3.0, %v359_v44  ;;  %v380_v47 = vadd.f32 1.0, %v359_v44 }
 0x254   :  { %vm361_vm1 = vcmp.ge.f32.partialorder %v360_v45, 6.0  ;;  %v428_v48 = vadd.f32 -6.0, %v360_v45  ;;  %vm371_vm2 = vcmp.ge.f32.partialorder %v370_v46, 6.0  ;;  %v429_v49 = vadd.f32 -6.0, %v370_v46 }
 0x255   :  { %vm381_vm3 = vcmp.ge.f32.partialorder %v380_v47, 6.0  ;;  %v430_v50 = vadd.f32 -6.0, %v380_v47 }
 0x256   :  { %v363_v51 = vsel %vm361_vm1, %v428_v48, %v360_v45  ;;  %v373_v52 = vsel %vm371_vm2, %v429_v49, %v370_v46 }
 0x257   :  { %v364_v53 = vsub.f32 4.0, %v363_v51  ;;  %v374_v54 = vsub.f32 4.0, %v373_v52  ;;  %v383_v55 = vsel %vm381_vm3, %v430_v50, %v380_v47 }
 0x258   :  { %v384_v56 = vsub.f32 4.0, %v383_v55 }
 0x259   :  { %v365_v57 = vmin.f32 %v363_v51, %v364_v53  ;;  %v375_v58 = vmin.f32 %v373_v52, %v374_v54 }
 0x25a   :  { %v385_v59 = vmin.f32 %v383_v55, %v384_v56 }
 0x25b   :  { %v366_v60 = vmax.f32 %v365_v57, 0.0  ;;  %v376_v61 = vmax.f32 %v375_v58, 0.0 }
 0x25c   :  { %v386_v62 = vmax.f32 %v385_v59, 0.0 }
 0x25d   :  { %v367_v63 = vmin.f32 %v366_v60, 1.0  ;;  %v377_v0 = vmin.f32 %v376_v61, 1.0 }
 0x25e   :  { %v387_v1 = vmin.f32 %v386_v62, 1.0 }
 0x25f   :  { %v368_v2 = vmul.f32 %v367_v63, %v358_v16  ;;  %v378_v3 = vmul.f32 %v377_v0, %v358_v16 }
 0x260   :  { %v388_v4 = vmul.f32 %v387_v1, %v358_v16 }
 0x261   :  { %v369_v5 = vsub.f32 %v575_v14, %v368_v2  ;;  %v379_v6 = vsub.f32 %v575_v14, %v378_v3 }
 0x262   :  { %v389_v7 = vsub.f32 %v575_v14, %v388_v4 }
 0x263   :  { %431 = vst [vmem:[%s594_s2 + $0x6] sm:$0x3] %v369_v5 }
 0x264   :  { %432 = vst [vmem:[%s594_s2 + $0x8] sm:$0x3] %v379_v6 }
 0x265   :  { %433 = vst [vmem:[%s594_s2 + $0xa] sm:$0x3] %v389_v7 }
 0x266 PF:  { %400 = vsyncpa [#allocation3], 1 }

</bundles_post_ra>
